<compile_context>
chip_gen: v7x
topology: tpu7x:2x2x1
jax: 0.10.0
libtpu: 0.0.40
codegen_flags: <defaults>
</compile_context>

<pallas_src>
import jax
import jax.numpy as jnp
from jax import lax
from jax.experimental import pallas as pl
from jax.experimental.pallas import tpu as pltpu

# ---------------- hyperparameters (small, forward-consistent) ----------------
HIDDEN_SIZE = 32          # hidden_size
EMBED_SIZE = 32           # embedding_size (encoder & decoder)
NUM_LAYERS = 2            # num_layers (hard-fused as two explicit layers)
VOCAB_SRC = 32            # len(german.vocab)
VOCAB_TGT = 32            # len(english.vocab) (also output_size)
VOCAB_PAD = 128           # lane-dense decoder output width
BATCH = 4
BATCH_PAD = 8             # f32 sublane height -> unmasked vreg ops
SEQ_LEN = 8
TEACHER_FORCE_RATIO = 0.5

_H = HIDDEN_SIZE
_G = 4 * HIDDEN_SIZE      # fused gate width (i, f, g, o)


def _vmem_spec(shape):
    # whole-array block (no grid) -> legal regardless of (8,128) tiling
    return pl.BlockSpec(shape, lambda: (0,) * len(shape))


_SMEM_SPEC = pl.BlockSpec(memory_space=pltpu.MemorySpace.SMEM)


# --------------------------- in-kernel LSTM cell -----------------------------
def _lstm_cell_from_gates(gates, c):
    """gates = x_proj + h @ W_hh + b with the g-gate columns pre-scaled by 2,
    so one sigmoid pass recovers tanh via tanh(z) = 2*sigmoid(2z) - 1."""
    sig = jax.nn.sigmoid(gates)                  # single full-width EUP pass
    i = sig[:, 0 * _H:1 * _H]
    f = sig[:, 1 * _H:2 * _H]
    g = 2.0 * sig[:, 2 * _H:3 * _H] - 1.0        # == tanh(raw g pre-activation)
    o = sig[:, 3 * _H:4 * _H]
    c_new = f * c + i * g
    h_new = o * jnp.tanh(c_new)
    return h_new, c_new


# ------------------------------- fused kernel --------------------------------
def _seq2seq_kernel(tf_ref,                      # SMEM (T,) f32: 1.0 = teacher
                    src_ids_ref, tgt_ids_ref,    # VMEM (T*B, 1) int32
                    ew_x0_ref, ew_hh0_ref, eb0_ref,     # encoder layer 0
                    ew_ih1_ref, ew_hh1_ref, eb1_ref,    # encoder layer 1
                    dw_x0_ref, dw_hh0_ref, db0_ref,     # decoder layer 0
                    dw_ih1_ref, dw_hh1_ref, db1_ref,    # decoder layer 1
                    fcw_ref, fcb_ref,                   # FC head (lane-dense)
                    out_ref,                     # (T, B, V_PAD) logits
                    x0_ref, xt_ref):             # scratch (T*B, 4H) f32
    T, B, VP = out_ref.shape
    TB = x0_ref.shape[0]

    # ---- batched input projections (off the serial dependency chain) -------
    # Encoder layer-0: one_hot(src) @ (emb_enc @ W_ih0) for all T*B rows.
    src_ids = src_ids_ref[...]                                       # (TB, 1)
    src_col = lax.broadcasted_iota(jnp.int32, (TB, VOCAB_SRC), 1)
    src_oh = (src_ids == src_col).astype(jnp.float32)                # (TB, Vs)
    x0_ref[...] = jnp.dot(src_oh, ew_x0_ref[...],
                          preferred_element_type=jnp.float32)        # (TB, 4H)

    # Decoder teacher-forced inputs: one_hot(tgt) @ (emb_dec @ W_ih0), all T*B.
    tgt_ids = tgt_ids_ref[...]                                       # (TB, 1)
    tgt_col = lax.broadcasted_iota(jnp.int32, (TB, VP), 1)
    tgt_oh = (tgt_ids == tgt_col).astype(jnp.float32)                # (TB, VP)
    xt_ref[...] = jnp.dot(tgt_oh, dw_x0_ref[...],
                          preferred_element_type=jnp.float32)        # (TB, 4H)

    # ---- encoder: 2-layer LSTM over T steps ---------------------------------
    ew_hh0 = ew_hh0_ref[...]; eb0 = eb0_ref[...]
    ew_ih1 = ew_ih1_ref[...]; ew_hh1 = ew_hh1_ref[...]; eb1 = eb1_ref[...]
    zeros = jnp.zeros((B, _H), jnp.float32)

    def enc_step(t, carry):
        h0, c0, h1, c1 = carry
        row = pl.multiple_of(t * B, B)
        g0 = (x0_ref[pl.ds(row, B), :]
              + jnp.dot(h0, ew_hh0, preferred_element_type=jnp.float32) + eb0)
        h0, c0 = _lstm_cell_from_gates(g0, c0)
        g1 = (jnp.dot(h0, ew_ih1, preferred_element_type=jnp.float32)
              + jnp.dot(h1, ew_hh1, preferred_element_type=jnp.float32) + eb1)
        h1, c1 = _lstm_cell_from_gates(g1, c1)
        return h0, c0, h1, c1

    h0, c0, h1, c1 = lax.fori_loop(0, T, enc_step, (zeros, zeros, zeros, zeros))

    # ---- decoder: teacher-forcing loop, 2-layer LSTM, FC, argmax ------------
    dw_hh0 = dw_hh0_ref[...]; db0 = db0_ref[...]
    dw_ih1 = dw_ih1_ref[...]; dw_hh1 = dw_hh1_ref[...]; db1 = db1_ref[...]
    fcw = fcw_ref[...]; fcb = fcb_ref[...]
    col = lax.broadcasted_iota(jnp.int32, (B, VP), 1)

    # outputs[0] stays at ones, matching the torch.ones init of the reference
    out_ref[0] = jnp.ones((B, VP), jnp.float32)

    def dec_step(i, carry):
        x_proj, h0, c0, h1, c1 = carry
        g0 = (x_proj
              + jnp.dot(h0, dw_hh0, preferred_element_type=jnp.float32) + db0)
        h0, c0 = _lstm_cell_from_gates(g0, c0)
        g1 = (jnp.dot(h0, dw_ih1, preferred_element_type=jnp.float32)
              + jnp.dot(h1, dw_hh1, preferred_element_type=jnp.float32) + db1)
        h1, c1 = _lstm_cell_from_gates(g1, c1)
        logits = jnp.dot(h1, fcw, preferred_element_type=jnp.float32) + fcb
        out_ref[i] = logits                     # unmasked full-lane (B,128) vst

        # greedy one-hot = first-occurrence argmax (pad cols carry -1e9 bias)
        row_max = jnp.max(logits, axis=1, keepdims=True)
        cand = jnp.where(logits == row_max, col, VP)
        amin = jnp.min(cand, axis=1, keepdims=True)
        greedy_oh = (col == amin).astype(jnp.float32)                # (B, VP)
        greedy_proj = jnp.dot(greedy_oh, dw_x0_ref[...],
                              preferred_element_type=jnp.float32)    # (B, 4H)

        # teacher-forcing blend of already-projected inputs (linear => exact)
        tf = tf_ref[i]
        row = pl.multiple_of(i * B, B)
        x_next = tf * xt_ref[pl.ds(row, B), :] + (1.0 - tf) * greedy_proj
        return x_next, h0, c0, h1, c1

    lax.fori_loop(1, T, dec_step,
                  (xt_ref[pl.ds(0, B), :], h0, c0, h1, c1))


# ------------------------------ parameter setup ------------------------------
def _uniform(key, shape, k):
    return jax.random.uniform(key, shape, jnp.float32, -k, k)


def _scale_g_cols(w):
    """Scale the g-gate columns by 2 so in-kernel 2*sigmoid-1 reproduces tanh."""
    return jnp.concatenate(
        [w[..., :2 * _H], 2.0 * w[..., 2 * _H:3 * _H], w[..., 3 * _H:]], axis=-1)


def _lstm_layer_params(keys, in_dim, k):
    k1, k2, k3, k4 = keys
    w_ih = _scale_g_cols(_uniform(k1, (in_dim, _G), k))        # W_ih^T
    w_hh = _scale_g_cols(_uniform(k2, (_H, _G), k))            # W_hh^T
    b = _scale_g_cols(_uniform(k3, (1, _G), k) + _uniform(k4, (1, _G), k))
    b = jnp.asarray(jnp.broadcast_to(b, (BATCH_PAD, _G)))      # pre-broadcast
    return w_ih, w_hh, b


def init_params(key):
    k = 1.0 / (HIDDEN_SIZE ** 0.5)
    it = iter(jax.random.split(key, 24))

    # encoder
    emb_e = jax.random.normal(next(it), (VOCAB_SRC, EMBED_SIZE), jnp.float32)
    e_wih0, e_whh0, e_b0 = _lstm_layer_params([next(it) for _ in range(4)],
                                              EMBED_SIZE, k)
    e_wih1, e_whh1, e_b1 = _lstm_layer_params([next(it) for _ in range(4)],
                                              HIDDEN_SIZE, k)
    enc = dict(
        w_x0=jnp.dot(emb_e, e_wih0),     # embedding folded into input proj
        w_hh0=e_whh0, b0=e_b0, w_ih1=e_wih1, w_hh1=e_whh1, b1=e_b1)

    # decoder
    emb_d = jax.random.normal(next(it), (VOCAB_TGT, EMBED_SIZE), jnp.float32)
    d_wih0, d_whh0, d_b0 = _lstm_layer_params([next(it) for _ in range(4)],
                                              EMBED_SIZE, k)
    d_wih1, d_whh1, d_b1 = _lstm_layer_params([next(it) for _ in range(4)],
                                              HIDDEN_SIZE, k)
    w_x0 = jnp.dot(emb_d, d_wih0)                                # (V_TGT, 4H)
    w_x0 = jnp.pad(w_x0, ((0, VOCAB_PAD - VOCAB_TGT), (0, 0)))   # (V_PAD, 4H)

    fc_w = _uniform(next(it), (HIDDEN_SIZE, VOCAB_TGT), k)
    fc_w = jnp.pad(fc_w, ((0, 0), (0, VOCAB_PAD - VOCAB_TGT)))   # (H, V_PAD)
    fc_b = _uniform(next(it), (1, VOCAB_TGT), k)
    fc_b = jnp.concatenate(                                      # -1e9 on pads
        [fc_b, jnp.full((1, VOCAB_PAD - VOCAB_TGT), -1e9, jnp.float32)], axis=1)
    fc_b = jnp.asarray(jnp.broadcast_to(fc_b, (BATCH_PAD, VOCAB_PAD)))

    dec = dict(w_x0=w_x0, w_hh0=d_whh0, b0=d_b0,
               w_ih1=d_wih1, w_hh1=d_whh1, b1=d_b1, fc_w=fc_w, fc_b=fc_b)
    return {"enc": enc, "dec": dec}


# -------------------------------- model forward -------------------------------
def seq2seq_forward(target, source, params, tf_key,
                    teacher_force_ratio=TEACHER_FORCE_RATIO):
    """target, source: (T, B) int32 token ids. Returns (T, B, VOCAB_TGT) f32."""
    # target_length comes from source, as in the reference implementation
    T = source.shape[0]
    B = target.shape[1]
    pad = BATCH_PAD - B
    src_ids = jnp.pad(source, ((0, 0), (0, pad))).astype(jnp.int32)
    tgt_ids = jnp.pad(target, ((0, 0), (0, pad))).astype(jnp.int32)
    src_ids = src_ids.reshape(T * BATCH_PAD, 1)
    tgt_ids = tgt_ids.reshape(T * BATCH_PAD, 1)

    # deterministic stand-in for python random.random() teacher-forcing draws
    tf_flags = (jax.random.uniform(tf_key, (T,))
                < teacher_force_ratio).astype(jnp.float32)            # (T,)

    enc, dec = params["enc"], params["dec"]
    vmem_args = (src_ids, tgt_ids,
                 enc["w_x0"], enc["w_hh0"], enc["b0"],
                 enc["w_ih1"], enc["w_hh1"], enc["b1"],
                 dec["w_x0"], dec["w_hh0"], dec["b0"],
                 dec["w_ih1"], dec["w_hh1"], dec["b1"],
                 dec["fc_w"], dec["fc_b"])
    out = pl.pallas_call(
        _seq2seq_kernel,
        out_shape=jax.ShapeDtypeStruct((T, BATCH_PAD, VOCAB_PAD), jnp.float32),
        in_specs=[_SMEM_SPEC] + [_vmem_spec(a.shape) for a in vmem_args],
        out_specs=_vmem_spec((T, BATCH_PAD, VOCAB_PAD)),
        scratch_shapes=[pltpu.VMEM((T * BATCH_PAD, _G), jnp.float32),
                        pltpu.VMEM((T * BATCH_PAD, _G), jnp.float32)],
    )(tf_flags, *vmem_args)
    return out[:, :B, :VOCAB_TGT]


# ------------------------------------ main ------------------------------------
if __name__ == "__main__":
    key = jax.random.PRNGKey(0)
    k_params, k_src, k_tgt, k_tf = jax.random.split(key, 4)

    params = init_params(k_params)

    source = jax.random.randint(k_src, (SEQ_LEN, BATCH), 0, VOCAB_SRC, jnp.int32)
    target = jax.random.randint(k_tgt, (SEQ_LEN, BATCH), 0, VOCAB_TGT, jnp.int32)

    fwd = jax.jit(seq2seq_forward)
    out = jax.block_until_ready(fwd(target, source, params, k_tf))

    assert out.shape == (SEQ_LEN, BATCH, VOCAB_TGT), out.shape
    assert out.dtype == jnp.float32
    assert bool(jnp.all(jnp.isfinite(out)))
    print("KERNEL_OK")
</pallas_src>

<mosaic_0001>
module attributes {stable_mosaic.version = 11 : i64} {
  func.func @_seq2seq_kernel(%arg0: memref<8xf32, #tpu.memory_space<smem>>, %arg1: memref<64x1xi32, #tpu.memory_space<vmem>>, %arg2: memref<64x1xi32, #tpu.memory_space<vmem>>, %arg3: memref<32x128xf32, #tpu.memory_space<vmem>>, %arg4: memref<32x128xf32, #tpu.memory_space<vmem>>, %arg5: memref<8x128xf32, #tpu.memory_space<vmem>>, %arg6: memref<32x128xf32, #tpu.memory_space<vmem>>, %arg7: memref<32x128xf32, #tpu.memory_space<vmem>>, %arg8: memref<8x128xf32, #tpu.memory_space<vmem>>, %arg9: memref<128x128xf32, #tpu.memory_space<vmem>>, %arg10: memref<32x128xf32, #tpu.memory_space<vmem>>, %arg11: memref<8x128xf32, #tpu.memory_space<vmem>>, %arg12: memref<32x128xf32, #tpu.memory_space<vmem>>, %arg13: memref<32x128xf32, #tpu.memory_space<vmem>>, %arg14: memref<8x128xf32, #tpu.memory_space<vmem>>, %arg15: memref<32x128xf32, #tpu.memory_space<vmem>>, %arg16: memref<8x128xf32, #tpu.memory_space<vmem>>, %arg17: memref<8x8x128xf32, #tpu.memory_space<vmem>>, %arg18: memref<64x128xf32, #tpu.memory_space<vmem>>, %arg19: memref<64x128xf32, #tpu.memory_space<vmem>>) attributes {dimension_semantics = [], scalar_prefetch = 0 : i64, scratch_operands = 2 : i64, tpu.core_type = #tpu.core_type<tc>} {
    %c0 = arith.constant 0 : index
    %c0_0 = arith.constant 0 : index
    %0 = vector.load %arg1[%c0, %c0_0] : memref<64x1xi32, #tpu.memory_space<vmem>>, vector<64x1xi32>
    %1 = tpu.iota {dimensions = array<i32: 1>} : vector<64x32xi32>
    %2 = vector.broadcast %0 : vector<64x1xi32> to vector<64x32xi32>
    %3 = arith.cmpi eq, %2, %1 : vector<64x32xi32>
    %4 = arith.extui %3 : vector<64x32xi1> to vector<64x32xi32>
    %5 = arith.sitofp %4 : vector<64x32xi32> to vector<64x32xf32>
    %c0_1 = arith.constant 0 : index
    %c0_2 = arith.constant 0 : index
    %6 = vector.load %arg3[%c0_1, %c0_2] : memref<32x128xf32, #tpu.memory_space<vmem>>, vector<32x128xf32>
    %cst = arith.constant dense<0.000000e+00> : vector<64x128xf32>
    %7 = tpu.matmul %5, %6, %cst {dimension_numbers = #tpu.dot_dimension_numbers<[1], [0], [0], [1], [0, 0, 1, 1], [], []>} : vector<64x32xf32>, vector<32x128xf32>, vector<64x128xf32> -> vector<64x128xf32>
    %c0_3 = arith.constant 0 : index
    %c0_4 = arith.constant 0 : index
    %8 = vector.load %arg18[%c0_3, %c0_4] : memref<64x128xf32, #tpu.memory_space<vmem>>, vector<64x128xf32>
    tpu.vector_store %arg18[%c0_3, %c0_4], %7 {strides = array<i32>} : memref<64x128xf32, #tpu.memory_space<vmem>>, vector<64x128xf32>,
    %c0_5 = arith.constant 0 : index
    %c0_6 = arith.constant 0 : index
    %9 = vector.load %arg2[%c0_5, %c0_6] : memref<64x1xi32, #tpu.memory_space<vmem>>, vector<64x1xi32>
    %10 = tpu.iota {dimensions = array<i32: 1>} : vector<64x128xi32>
    %11 = vector.broadcast %9 : vector<64x1xi32> to vector<64x128xi32>
    %12 = arith.cmpi eq, %11, %10 : vector<64x128xi32>
    %13 = arith.extui %12 : vector<64x128xi1> to vector<64x128xi32>
    %14 = arith.sitofp %13 : vector<64x128xi32> to vector<64x128xf32>
    %c0_7 = arith.constant 0 : index
    %c0_8 = arith.constant 0 : index
    %15 = vector.load %arg9[%c0_7, %c0_8] : memref<128x128xf32, #tpu.memory_space<vmem>>, vector<128x128xf32>
    %cst_9 = arith.constant dense<0.000000e+00> : vector<64x128xf32>
    %16 = tpu.matmul %14, %15, %cst_9 {dimension_numbers = #tpu.dot_dimension_numbers<[1], [0], [0], [1], [0, 0, 1, 1], [], []>} : vector<64x128xf32>, vector<128x128xf32>, vector<64x128xf32> -> vector<64x128xf32>
    %c0_10 = arith.constant 0 : index
    %c0_11 = arith.constant 0 : index
    %17 = vector.load %arg19[%c0_10, %c0_11] : memref<64x128xf32, #tpu.memory_space<vmem>>, vector<64x128xf32>
    tpu.vector_store %arg19[%c0_10, %c0_11], %16 {strides = array<i32>} : memref<64x128xf32, #tpu.memory_space<vmem>>, vector<64x128xf32>,
    %c0_12 = arith.constant 0 : index
    %c0_13 = arith.constant 0 : index
    %18 = vector.load %arg4[%c0_12, %c0_13] : memref<32x128xf32, #tpu.memory_space<vmem>>, vector<32x128xf32>
    %c0_14 = arith.constant 0 : index
    %c0_15 = arith.constant 0 : index
    %19 = vector.load %arg5[%c0_14, %c0_15] : memref<8x128xf32, #tpu.memory_space<vmem>>, vector<8x128xf32>
    %c0_16 = arith.constant 0 : index
    %c0_17 = arith.constant 0 : index
    %20 = vector.load %arg6[%c0_16, %c0_17] : memref<32x128xf32, #tpu.memory_space<vmem>>, vector<32x128xf32>
    %c0_18 = arith.constant 0 : index
    %c0_19 = arith.constant 0 : index
    %21 = vector.load %arg7[%c0_18, %c0_19] : memref<32x128xf32, #tpu.memory_space<vmem>>, vector<32x128xf32>
    %c0_20 = arith.constant 0 : index
    %c0_21 = arith.constant 0 : index
    %22 = vector.load %arg8[%c0_20, %c0_21] : memref<8x128xf32, #tpu.memory_space<vmem>>, vector<8x128xf32>
    %cst_22 = arith.constant 0.000000e+00 : f32
    %23 = vector.broadcast %cst_22 : f32 to vector<8x32xf32>
    %c0_i32 = arith.constant 0 : i32
    %c8_i32 = arith.constant 8 : i32
    %24 = arith.addi %c0_i32, %c8_i32 : i32
    %c1_i32 = arith.constant 1 : i32
    %25:4 = scf.for %arg20 = %c0_i32 to %24 step %c1_i32 iter_args(%arg21 = %23, %arg22 = %23, %arg23 = %23, %arg24 = %23) -> (vector<8x32xf32>, vector<8x32xf32>, vector<8x32xf32>, vector<8x32xf32>)  : i32 {
      %c8_i32_47 = arith.constant 8 : i32
      %41 = arith.muli %arg20, %c8_i32_47 : i32
      %42 = tpu.assume_multiple %41, 8 : i32
      %43 = arith.index_cast %42 : i32 to index
      %c0_48 = arith.constant 0 : index
      %44 = vector.load %arg18[%43, %c0_48] : memref<64x128xf32, #tpu.memory_space<vmem>>, vector<8x128xf32>
      %cst_49 = arith.constant dense<0.000000e+00> : vector<8x128xf32>
      %45 = tpu.matmul %arg21, %18, %cst_49 {dimension_numbers = #tpu.dot_dimension_numbers<[1], [0], [0], [1], [0, 0, 1, 1], [], []>} : vector<8x32xf32>, vector<32x128xf32>, vector<8x128xf32> -> vector<8x128xf32>
      %46 = arith.addf %44, %45 : vector<8x128xf32>
      %47 = arith.addf %46, %19 : vector<8x128xf32>
      %48 = arith.negf %47 : vector<8x128xf32>
      %49 = math.exp %48 : vector<8x128xf32>
      %cst_50 = arith.constant 1.000000e+00 : f32
      %50 = vector.broadcast %cst_50 : f32 to vector<8x128xf32>
      %51 = arith.addf %50, %49 : vector<8x128xf32>
      %52 = arith.divf %50, %51 : vector<8x128xf32>
      %53 = vector.extract_strided_slice %52 {offsets = [0, 0], sizes = [8, 32], strides = [1, 1]} : vector<8x128xf32> to vector<8x32xf32>
      %54 = vector.extract_strided_slice %52 {offsets = [0, 32], sizes = [8, 32], strides = [1, 1]} : vector<8x128xf32> to vector<8x32xf32>
      %55 = vector.extract_strided_slice %52 {offsets = [0, 64], sizes = [8, 32], strides = [1, 1]} : vector<8x128xf32> to vector<8x32xf32>
      %cst_51 = arith.constant 2.000000e+00 : f32
      %56 = vector.broadcast %cst_51 : f32 to vector<8x32xf32>
      %57 = arith.mulf %56, %55 : vector<8x32xf32>
      %cst_52 = arith.constant 1.000000e+00 : f32
      %58 = vector.broadcast %cst_52 : f32 to vector<8x32xf32>
      %59 = arith.subf %57, %58 : vector<8x32xf32>
      %60 = vector.extract_strided_slice %52 {offsets = [0, 96], sizes = [8, 32], strides = [1, 1]} : vector<8x128xf32> to vector<8x32xf32>
      %61 = arith.mulf %54, %arg22 : vector<8x32xf32>
      %62 = arith.mulf %53, %59 : vector<8x32xf32>
      %63 = arith.addf %61, %62 : vector<8x32xf32>
      %64 = math.tanh %63 : vector<8x32xf32>
      %65 = arith.mulf %60, %64 : vector<8x32xf32>
      %cst_53 = arith.constant dense<0.000000e+00> : vector<8x128xf32>
      %66 = tpu.matmul %65, %20, %cst_53 {dimension_numbers = #tpu.dot_dimension_numbers<[1], [0], [0], [1], [0, 0, 1, 1], [], []>} : vector<8x32xf32>, vector<32x128xf32>, vector<8x128xf32> -> vector<8x128xf32>
      %cst_54 = arith.constant dense<0.000000e+00> : vector<8x128xf32>
      %67 = tpu.matmul %arg23, %21, %cst_54 {dimension_numbers = #tpu.dot_dimension_numbers<[1], [0], [0], [1], [0, 0, 1, 1], [], []>} : vector<8x32xf32>, vector<32x128xf32>, vector<8x128xf32> -> vector<8x128xf32>
      %68 = arith.addf %66, %67 : vector<8x128xf32>
      %69 = arith.addf %68, %22 : vector<8x128xf32>
      %70 = arith.negf %69 : vector<8x128xf32>
      %71 = math.exp %70 : vector<8x128xf32>
      %cst_55 = arith.constant 1.000000e+00 : f32
      %72 = vector.broadcast %cst_55 : f32 to vector<8x128xf32>
      %73 = arith.addf %72, %71 : vector<8x128xf32>
      %74 = arith.divf %72, %73 : vector<8x128xf32>
      %75 = vector.extract_strided_slice %74 {offsets = [0, 0], sizes = [8, 32], strides = [1, 1]} : vector<8x128xf32> to vector<8x32xf32>
      %76 = vector.extract_strided_slice %74 {offsets = [0, 32], sizes = [8, 32], strides = [1, 1]} : vector<8x128xf32> to vector<8x32xf32>
      %77 = vector.extract_strided_slice %74 {offsets = [0, 64], sizes = [8, 32], strides = [1, 1]} : vector<8x128xf32> to vector<8x32xf32>
      %cst_56 = arith.constant 2.000000e+00 : f32
      %78 = vector.broadcast %cst_56 : f32 to vector<8x32xf32>
      %79 = arith.mulf %78, %77 : vector<8x32xf32>
      %cst_57 = arith.constant 1.000000e+00 : f32
      %80 = vector.broadcast %cst_57 : f32 to vector<8x32xf32>
      %81 = arith.subf %79, %80 : vector<8x32xf32>
      %82 = vector.extract_strided_slice %74 {offsets = [0, 96], sizes = [8, 32], strides = [1, 1]} : vector<8x128xf32> to vector<8x32xf32>
      %83 = arith.mulf %76, %arg24 : vector<8x32xf32>
      %84 = arith.mulf %75, %81 : vector<8x32xf32>
      %85 = arith.addf %83, %84 : vector<8x32xf32>
      %86 = math.tanh %85 : vector<8x32xf32>
      %87 = arith.mulf %82, %86 : vector<8x32xf32>
      scf.yield %65, %63, %87, %85 : vector<8x32xf32>, vector<8x32xf32>, vector<8x32xf32>, vector<8x32xf32>
    }
    %c8_i32_23 = arith.constant 8 : i32
    %c0_24 = arith.constant 0 : index
    %c0_25 = arith.constant 0 : index
    %26 = vector.load %arg10[%c0_24, %c0_25] : memref<32x128xf32, #tpu.memory_space<vmem>>, vector<32x128xf32>
    %c0_26 = arith.constant 0 : index
    %c0_27 = arith.constant 0 : index
    %27 = vector.load %arg11[%c0_26, %c0_27] : memref<8x128xf32, #tpu.memory_space<vmem>>, vector<8x128xf32>
    %c0_28 = arith.constant 0 : index
    %c0_29 = arith.constant 0 : index
    %28 = vector.load %arg12[%c0_28, %c0_29] : memref<32x128xf32, #tpu.memory_space<vmem>>, vector<32x128xf32>
    %c0_30 = arith.constant 0 : index
    %c0_31 = arith.constant 0 : index
    %29 = vector.load %arg13[%c0_30, %c0_31] : memref<32x128xf32, #tpu.memory_space<vmem>>, vector<32x128xf32>
    %c0_32 = arith.constant 0 : index
    %c0_33 = arith.constant 0 : index
    %30 = vector.load %arg14[%c0_32, %c0_33] : memref<8x128xf32, #tpu.memory_space<vmem>>, vector<8x128xf32>
    %c0_34 = arith.constant 0 : index
    %c0_35 = arith.constant 0 : index
    %31 = vector.load %arg15[%c0_34, %c0_35] : memref<32x128xf32, #tpu.memory_space<vmem>>, vector<32x128xf32>
    %c0_36 = arith.constant 0 : index
    %c0_37 = arith.constant 0 : index
    %32 = vector.load %arg16[%c0_36, %c0_37] : memref<8x128xf32, #tpu.memory_space<vmem>>, vector<8x128xf32>
    %33 = tpu.iota {dimensions = array<i32: 1>} : vector<8x128xi32>
    %cst_38 = arith.constant 1.000000e+00 : f32
    %34 = vector.broadcast %cst_38 : f32 to vector<8x128xf32>
    %c0_39 = arith.constant 0 : index
    %c0_40 = arith.constant 0 : index
    %c0_41 = arith.constant 0 : index
    %35 = vector.load %arg17[%c0_39, %c0_40, %c0_41] : memref<8x8x128xf32, #tpu.memory_space<vmem>>, vector<1x8x128xf32>
    %36 = vector.shape_cast %35 : vector<1x8x128xf32> to vector<8x128xf32>
    %37 = vector.shape_cast %34 : vector<8x128xf32> to vector<1x8x128xf32>
    tpu.vector_store %arg17[%c0_39, %c0_40, %c0_41], %37 {strides = array<i32>} : memref<8x8x128xf32, #tpu.memory_space<vmem>>, vector<1x8x128xf32>,
    %c0_42 = arith.constant 0 : index
    %c0_43 = arith.constant 0 : index
    %38 = vector.load %arg19[%c0_42, %c0_43] : memref<64x128xf32, #tpu.memory_space<vmem>>, vector<8x128xf32>
    %c1_i32_44 = arith.constant 1 : i32
    %c7_i32 = arith.constant 7 : i32
    %39 = arith.addi %c1_i32_44, %c7_i32 : i32
    %c1_i32_45 = arith.constant 1 : i32
    %40:5 = scf.for %arg20 = %c1_i32_44 to %39 step %c1_i32_45 iter_args(%arg21 = %38, %arg22 = %25#0, %arg23 = %25#1, %arg24 = %25#2, %arg25 = %25#3) -> (vector<8x128xf32>, vector<8x32xf32>, vector<8x32xf32>, vector<8x32xf32>, vector<8x32xf32>)  : i32 {
      %cst_47 = arith.constant dense<0.000000e+00> : vector<8x128xf32>
      %41 = tpu.matmul %arg22, %26, %cst_47 {dimension_numbers = #tpu.dot_dimension_numbers<[1], [0], [0], [1], [0, 0, 1, 1], [], []>} : vector<8x32xf32>, vector<32x128xf32>, vector<8x128xf32> -> vector<8x128xf32>
      %42 = arith.addf %arg21, %41 : vector<8x128xf32>
      %43 = arith.addf %42, %27 : vector<8x128xf32>
      %44 = arith.negf %43 : vector<8x128xf32>
      %45 = math.exp %44 : vector<8x128xf32>
      %cst_48 = arith.constant 1.000000e+00 : f32
      %46 = vector.broadcast %cst_48 : f32 to vector<8x128xf32>
      %47 = arith.addf %46, %45 : vector<8x128xf32>
      %48 = arith.divf %46, %47 : vector<8x128xf32>
      %49 = vector.extract_strided_slice %48 {offsets = [0, 0], sizes = [8, 32], strides = [1, 1]} : vector<8x128xf32> to vector<8x32xf32>
      %50 = vector.extract_strided_slice %48 {offsets = [0, 32], sizes = [8, 32], strides = [1, 1]} : vector<8x128xf32> to vector<8x32xf32>
      %51 = vector.extract_strided_slice %48 {offsets = [0, 64], sizes = [8, 32], strides = [1, 1]} : vector<8x128xf32> to vector<8x32xf32>
      %cst_49 = arith.constant 2.000000e+00 : f32
      %52 = vector.broadcast %cst_49 : f32 to vector<8x32xf32>
      %53 = arith.mulf %52, %51 : vector<8x32xf32>
      %cst_50 = arith.constant 1.000000e+00 : f32
      %54 = vector.broadcast %cst_50 : f32 to vector<8x32xf32>
      %55 = arith.subf %53, %54 : vector<8x32xf32>
      %56 = vector.extract_strided_slice %48 {offsets = [0, 96], sizes = [8, 32], strides = [1, 1]} : vector<8x128xf32> to vector<8x32xf32>
      %57 = arith.mulf %50, %arg23 : vector<8x32xf32>
      %58 = arith.mulf %49, %55 : vector<8x32xf32>
      %59 = arith.addf %57, %58 : vector<8x32xf32>
      %60 = math.tanh %59 : vector<8x32xf32>
      %61 = arith.mulf %56, %60 : vector<8x32xf32>
      %cst_51 = arith.constant dense<0.000000e+00> : vector<8x128xf32>
      %62 = tpu.matmul %61, %28, %cst_51 {dimension_numbers = #tpu.dot_dimension_numbers<[1], [0], [0], [1], [0, 0, 1, 1], [], []>} : vector<8x32xf32>, vector<32x128xf32>, vector<8x128xf32> -> vector<8x128xf32>
      %cst_52 = arith.constant dense<0.000000e+00> : vector<8x128xf32>
      %63 = tpu.matmul %arg24, %29, %cst_52 {dimension_numbers = #tpu.dot_dimension_numbers<[1], [0], [0], [1], [0, 0, 1, 1], [], []>} : vector<8x32xf32>, vector<32x128xf32>, vector<8x128xf32> -> vector<8x128xf32>
      %64 = arith.addf %62, %63 : vector<8x128xf32>
      %65 = arith.addf %64, %30 : vector<8x128xf32>
      %66 = arith.negf %65 : vector<8x128xf32>
      %67 = math.exp %66 : vector<8x128xf32>
      %cst_53 = arith.constant 1.000000e+00 : f32
      %68 = vector.broadcast %cst_53 : f32 to vector<8x128xf32>
      %69 = arith.addf %68, %67 : vector<8x128xf32>
      %70 = arith.divf %68, %69 : vector<8x128xf32>
      %71 = vector.extract_strided_slice %70 {offsets = [0, 0], sizes = [8, 32], strides = [1, 1]} : vector<8x128xf32> to vector<8x32xf32>
      %72 = vector.extract_strided_slice %70 {offsets = [0, 32], sizes = [8, 32], strides = [1, 1]} : vector<8x128xf32> to vector<8x32xf32>
      %73 = vector.extract_strided_slice %70 {offsets = [0, 64], sizes = [8, 32], strides = [1, 1]} : vector<8x128xf32> to vector<8x32xf32>
      %cst_54 = arith.constant 2.000000e+00 : f32
      %74 = vector.broadcast %cst_54 : f32 to vector<8x32xf32>
      %75 = arith.mulf %74, %73 : vector<8x32xf32>
      %cst_55 = arith.constant 1.000000e+00 : f32
      %76 = vector.broadcast %cst_55 : f32 to vector<8x32xf32>
      %77 = arith.subf %75, %76 : vector<8x32xf32>
      %78 = vector.extract_strided_slice %70 {offsets = [0, 96], sizes = [8, 32], strides = [1, 1]} : vector<8x128xf32> to vector<8x32xf32>
      %79 = arith.mulf %72, %arg25 : vector<8x32xf32>
      %80 = arith.mulf %71, %77 : vector<8x32xf32>
      %81 = arith.addf %79, %80 : vector<8x32xf32>
      %82 = math.tanh %81 : vector<8x32xf32>
      %83 = arith.mulf %78, %82 : vector<8x32xf32>
      %cst_56 = arith.constant dense<0.000000e+00> : vector<8x128xf32>
      %84 = tpu.matmul %83, %31, %cst_56 {dimension_numbers = #tpu.dot_dimension_numbers<[1], [0], [0], [1], [0, 0, 1, 1], [], []>} : vector<8x32xf32>, vector<32x128xf32>, vector<8x128xf32> -> vector<8x128xf32>
      %85 = arith.addf %84, %32 : vector<8x128xf32>
      %86 = arith.index_cast %arg20 : i32 to index
      %c0_57 = arith.constant 0 : index
      %c0_58 = arith.constant 0 : index
      %87 = vector.load %arg17[%86, %c0_57, %c0_58] : memref<8x8x128xf32, #tpu.memory_space<vmem>>, vector<1x8x128xf32>
      %88 = vector.shape_cast %87 : vector<1x8x128xf32> to vector<8x128xf32>
      %89 = vector.shape_cast %85 : vector<8x128xf32> to vector<1x8x128xf32>
      tpu.vector_store %arg17[%86, %c0_57, %c0_58], %89 {strides = array<i32>} : memref<8x8x128xf32, #tpu.memory_space<vmem>>, vector<1x8x128xf32>,
      %cst_59 = arith.constant dense<0xFF800000> : vector<8xf32>
      %90 = vector.multi_reduction <maximumf>, %85, %cst_59 [1] : vector<8x128xf32> to vector<8xf32>
      %91 = vector.shape_cast %90 : vector<8xf32> to vector<8x1xf32>
      %92 = vector.broadcast %91 : vector<8x1xf32> to vector<8x128xf32>
      %93 = arith.cmpf oeq, %85, %92 : vector<8x128xf32>
      %c128_i32 = arith.constant 128 : i32
      %94 = vector.broadcast %c128_i32 : i32 to vector<8x128xi32>
      %95 = arith.select %93, %33, %94 : vector<8x128xi1>, vector<8x128xi32>
      %cst_60 = arith.constant dense<2147483647> : vector<8xi32>
      %96 = vector.multi_reduction <minsi>, %95, %cst_60 [1] : vector<8x128xi32> to vector<8xi32>
      %97 = vector.shape_cast %96 : vector<8xi32> to vector<8x1xi32>
      %98 = vector.broadcast %97 : vector<8x1xi32> to vector<8x128xi32>
      %99 = arith.cmpi eq, %33, %98 : vector<8x128xi32>
      %100 = arith.extui %99 : vector<8x128xi1> to vector<8x128xi32>
      %101 = arith.sitofp %100 : vector<8x128xi32> to vector<8x128xf32>
      %c0_61 = arith.constant 0 : index
      %c0_62 = arith.constant 0 : index
      %102 = vector.load %arg9[%c0_61, %c0_62] : memref<128x128xf32, #tpu.memory_space<vmem>>, vector<128x128xf32>
      %cst_63 = arith.constant dense<0.000000e+00> : vector<8x128xf32>
      %103 = tpu.matmul %101, %102, %cst_63 {dimension_numbers = #tpu.dot_dimension_numbers<[1], [0], [0], [1], [0, 0, 1, 1], [], []>} : vector<8x128xf32>, vector<128x128xf32>, vector<8x128xf32> -> vector<8x128xf32>
      %104 = arith.index_cast %arg20 : i32 to index
      %105 = memref.load %arg0[%104] : memref<8xf32, #tpu.memory_space<smem>>
      %c8_i32_64 = arith.constant 8 : i32
      %106 = arith.muli %arg20, %c8_i32_64 : i32
      %107 = tpu.assume_multiple %106, 8 : i32
      %108 = arith.index_cast %107 : i32 to index
      %c0_65 = arith.constant 0 : index
      %109 = vector.load %arg19[%108, %c0_65] : memref<64x128xf32, #tpu.memory_space<vmem>>, vector<8x128xf32>
      %110 = vector.broadcast %105 : f32 to vector<8x128xf32>
      %111 = arith.mulf %110, %109 : vector<8x128xf32>
      %cst_66 = arith.constant 1.000000e+00 : f32
      %112 = arith.subf %cst_66, %105 : f32
      %113 = vector.broadcast %112 : f32 to vector<8x128xf32>
      %114 = arith.mulf %113, %103 : vector<8x128xf32>
      %115 = arith.addf %111, %114 : vector<8x128xf32>
      scf.yield %115, %61, %59, %83, %81 : vector<8x128xf32>, vector<8x32xf32>, vector<8x32xf32>, vector<8x32xf32>, vector<8x32xf32>
    }
    %c7_i32_46 = arith.constant 7 : i32
    return
  }
}

</mosaic_0001>

<bundles_post_ra>
// kernel: seq2seq_forward.1
= control target key start
LH: loop header
LB: loop body
LE: loop exit
PB: predicated region body
PF: predicated region fallthrough
CT: control target
= control target key end

     0   :  { %s3045_s0 = inlined_call_operand.vmem [shape: f32[8], index: 0, kind: input, shape index: {}]   ;;  %s3046_s1 = inlined_call_operand.vmem [shape: s32[64,1], index: 1, kind: input, shape index: {}]   ;;  %s3047_s2 = inlined_call_operand.vmem [shape: s32[64,1], index: 2, kind: input, shape index: {}]   ;;  %s3048_s3 = inlined_call_operand.vmem [shape: f32[32,128], index: 3, kind: input, shape index: {}]   ;;  %s3049_s4 = inlined_call_operand.vmem [shape: f32[32,128], index: 4, kind: input, shape index: {}]   ;;  %s3050_s5 = inlined_call_operand.hbm [shape: f32[8,128], index: 5, kind: input, shape index: {}]   ;;  %s3051_s6 = inlined_call_operand.vmem [shape: f32[32,128], index: 6, kind: input, shape index: {}]   ;;  %s3052_s7 = inlined_call_operand.vmem [shape: f32[32,128], index: 7, kind: input, shape index: {}]   ;;  %s3053_s8 = inlined_call_operand.hbm [shape: f32[8,128], index: 8, kind: input, shape index: {}]   ;;  %s3054_s9 = inlined_call_operand.vmem [shape: f32[128,128], index: 9, kind: input, shape index: {}]   ;;  %s3055_s10 = inlined_call_operand.hbm [shape: f32[32,128], index: 10, kind: input, shape index: {}]   ;;  %s3056_s11 = inlined_call_operand.hbm [shape: f32[8,128], index: 11, kind: input, shape index: {}]   ;;  %s3057_s12 = inlined_call_operand.hbm [shape: f32[32,128], index: 12, kind: input, shape index: {}]   ;;  %s3058_s13 = inlined_call_operand.hbm [shape: f32[32,128], index: 13, kind: input, shape index: {}]   ;;  %s3059_s14 = inlined_call_operand.hbm [shape: f32[8,128], index: 14, kind: input, shape index: {}]   ;;  %s3060_s15 = inlined_call_operand.vmem [shape: f32[32,128], index: 15, kind: input, shape index: {}]   ;;  %s3061_s16 = inlined_call_operand.hbm [shape: f32[8,128], index: 16, kind: input, shape index: {}]   ;;  %s3062_s17 = inlined_call_operand.vmem [shape: f32[8,8,128], index: 17, kind: output, shape index: {}]  }
   0x1   :  { %3064 = sst [smem:[#allocation25_spill]] %s3045_s0 }
   0x2   :  { %3065 = sst [smem:[#allocation26_spill]] %s3046_s1 }
   0x3   :  { %22 = vsyncpa [#allocation6], 0 }
   0x4   :  { %23 = vsyncpa [#allocation5], 0 }
   0x5   :  { %24 = vsyncpa [#allocation9], 0 }
   0x6   :  { %25 = vsyncpa [#allocation12], 0 }
   0x7   :  { %26 = vsyncpa [#allocation15], 0 }
   0x8   :  { %27 = vsyncpa [#allocation18], 0  ;;  %s2279_s24 = smov [#allocation8]   ;;  %s2280_s26 = smov [#allocation11]  }
   0x9   :  { %s66_s25 = sshll.u32 %s2279_s24, 4  ;;  %s90_s27 = sshll.u32 %s2280_s26, 4  ;;  %s67_s25 = int_to_ptr.vmem [resolvable:$true] %s66_s25  ;;  %s91_s27 = int_to_ptr.vmem [resolvable:$true] %s90_s27 }
   0xa   :  { %s1991_s0 = scalar_lea.hbm %s3053_s8, 128 }
   0xb   :  { %p1992_p0 = scmp.ne.s32.totalorder %s3053_s8, %s1991_s0  ;;  %p1995_p1 = scmp.lt.u32.totalorder %s1991_s0, %s3053_s8 }
   0xd   :  { %p1997_p2 = pnand %p1995_p1, %p1992_p0 }
   0xf   :  { %2000 = shalt.err (!%p1997_p2)
}
  0x10   :  { %s2001_s20 = scalar_lea.vmem %s67_s25, 128  ;;  %p2006_p4 = scmp.lt.s32.totalorder %s67_s25, %s67_s25 }
  0x11   :  { %p2002_p3 = scmp.ne.s32.totalorder %s67_s25, %s2001_s20  ;;  %p2007_p5 = scmp.lt.s32.totalorder %s2001_s20, %s2001_s20 }
  0x13   :  { %p2008_p6 = por %p2007_p5, %p2006_p4 }
  0x15   :  { %p2009_p7 = pnand %p2008_p6, %p2002_p3 }
  0x17   :  { %2012 = shalt.err (!%p2009_p7)
}
  0x18   :  { %69 = dma.hbm_to_vmem [thread:$0]  %s3053_s8, 128, %s67_s25, [#allocation9]  }
  0x19   :  { %s2013_s26 = scalar_lea.hbm %s3056_s11, 128 }
  0x1a   :  { %p2014_p8 = scmp.ne.s32.totalorder %s3056_s11, %s2013_s26  ;;  %p2017_p9 = scmp.lt.u32.totalorder %s2013_s26, %s3056_s11 }
  0x1c   :  { %p2019_p10 = pnand %p2017_p9, %p2014_p8 }
  0x1e   :  { %2022 = shalt.err (!%p2019_p10)
}
  0x1f   :  { %s2023_s18 = scalar_lea.vmem %s91_s27, 128  ;;  %p2028_p12 = scmp.lt.s32.totalorder %s91_s27, %s91_s27 }
  0x20   :  { %p2024_p11 = scmp.ne.s32.totalorder %s91_s27, %s2023_s18  ;;  %p2029_p13 = scmp.lt.s32.totalorder %s2023_s18, %s2023_s18 }
  0x22   :  { %p2030_p0 = por %p2029_p13, %p2028_p12 }
  0x24   :  { %p2031_p1 = pnand %p2030_p0, %p2024_p11 }
  0x26   :  { %2034 = shalt.err (!%p2031_p1)
}
  0x27   :  { %93 = dma.hbm_to_vmem [thread:$0]  %s3056_s11, 128, %s91_s27, [#allocation12]  }
  0x28   :  { %s3066_s20 = sld [smem:[#allocation25_spill]]  ;;  %s2281_s22 = smov [#allocation14]  }
  0x29   :  { %s111_s23 = sshll.u32 %s2281_s22, 4  ;;  %s2035_s28 = scalar_lea.hbm %s3058_s13, 512  ;;  %s112_s23 = int_to_ptr.vmem [resolvable:$true] %s111_s23 }
  0x2a   :  { %p2036_p2 = scmp.ne.s32.totalorder %s3058_s13, %s2035_s28  ;;  %p2039_p3 = scmp.lt.u32.totalorder %s2035_s28, %s3058_s13 }
  0x2c   :  { %p2041_p4 = pnand %p2039_p3, %p2036_p2 }
  0x2e   :  { %s34_s21 = sshll.u32 %s3066_s20, 4  ;;  %s35_s21 = int_to_ptr.vmem [resolvable:$true] %s34_s21 }
  0x2f   :  { %2044 = shalt.err (!%p2041_p4)
}
  0x30   :  { %s2045_s11 = scalar_lea.vmem %s112_s23, 512  ;;  %p2050_p6 = scmp.lt.s32.totalorder %s112_s23, %s112_s23 }
  0x31   :  { %p2046_p5 = scmp.ne.s32.totalorder %s112_s23, %s2045_s11  ;;  %p2051_p7 = scmp.lt.s32.totalorder %s2045_s11, %s2045_s11 }
  0x33   :  { %p2052_p8 = por %p2051_p7, %p2050_p6 }
  0x35   :  { %p2053_p9 = pnand %p2052_p8, %p2046_p5 }
  0x37   :  { %2056 = shalt.err (!%p2053_p9)
}
  0x38   :  { %s2282_s27 = smov 128   ;;  %s2283_s8 = smov 8  }
  0x39   :  { %117 = dma.hbm_to_vmem [thread:$0]  %s3058_s13, 512, %s112_s23, [#allocation15], %s2282_s27, %s2282_s27, %s2283_s8  }
  0x3a   :  { %s2057_s1 = scalar_lea.vmem %s35_s21, 16  ;;  %p2062_p11 = scmp.lt.s32.totalorder %s35_s21, %s35_s21 }
  0x3b   :  { %p2058_p10 = scmp.ne.s32.totalorder %s35_s21, %s2057_s1  ;;  %p2063_p12 = scmp.lt.s32.totalorder %s2057_s1, %s2057_s1 }
  0x3d   :  { %p2064_p13 = por %p2063_p12, %p2062_p11 }
  0x3f   :  { %p2065_p0 = pnand %p2064_p13, %p2058_p10 }
  0x41   :  { %2068 = shalt.err (!%p2065_p0)
}
  0x42   :  { %s2284_s20 = smov [#allocation4]   ;;  %s2285_s22 = smov [#allocation7]  }
  0x43   :  { %37 = dma.vmem_to_smem %s35_s21, 16, %s2284_s20, [#allocation6]  }
  0x44   :  { %s52_s24 = sshll.u32 %s2285_s22, 4  ;;  %s2286_s26 = smov [#allocation10]   ;;  %s53_s24 = int_to_ptr.vmem [resolvable:$true] %s52_s24 }
  0x45   :  { %s77_s28 = sshll.u32 %s2286_s26, 4  ;;  %s2069_s13 = scalar_lea.hbm %s3050_s5, 128  ;;  %s2436_s28 = int_to_ptr.vmem [resolvable:$true] %s77_s28 }
  0x46   :  { %p2070_p1 = scmp.ne.s32.totalorder %s3050_s5, %s2069_s13  ;;  %p2073_p2 = scmp.lt.u32.totalorder %s2069_s13, %s3050_s5 }
  0x48   :  { %p2075_p3 = pnand %p2073_p2, %p2070_p1 }
  0x4a   :  { %2078 = shalt.err (!%p2075_p3)
}
  0x4b   :  { %s2079_s21 = scalar_lea.vmem %s53_s24, 128  ;;  %p2084_p5 = scmp.lt.s32.totalorder %s53_s24, %s53_s24 }
  0x4c   :  { %p2080_p4 = scmp.ne.s32.totalorder %s53_s24, %s2079_s21  ;;  %p2085_p6 = scmp.lt.s32.totalorder %s2079_s21, %s2079_s21 }
  0x4e   :  { %p2086_p7 = por %p2085_p6, %p2084_p5 }
  0x50   :  { %p2087_p8 = pnand %p2086_p7, %p2080_p4 }
  0x52   :  { %2090 = shalt.err (!%p2087_p8)
}
  0x53   :  { %55 = dma.hbm_to_vmem [thread:$0]  %s3050_s5, 128, %s53_s24, [#allocation5]  }
  0x54   :  { %s2091_s22 = scalar_lea.hbm %s3055_s10, 512 }
  0x55   :  { %p2092_p9 = scmp.ne.s32.totalorder %s3055_s10, %s2091_s22  ;;  %p2095_p10 = scmp.lt.u32.totalorder %s2091_s22, %s3055_s10 }
  0x57   :  { %p2097_p11 = pnand %p2095_p10, %p2092_p9 }
  0x59   :  { %2100 = shalt.err (!%p2097_p11)
}
  0x5a   :  { %s2101_s23 = scalar_lea.vmem %s2436_s28, 512  ;;  %p2106_p13 = scmp.lt.s32.totalorder %s2436_s28, %s2436_s28 }
  0x5b   :  { %p2102_p12 = scmp.ne.s32.totalorder %s2436_s28, %s2101_s23  ;;  %p2107_p0 = scmp.lt.s32.totalorder %s2101_s23, %s2101_s23 }
  0x5d   :  { %p2108_p1 = por %p2107_p0, %p2106_p13 }
  0x5f   :  { %p2109_p2 = pnand %p2108_p1, %p2102_p12 }
  0x61   :  { %2112 = shalt.err (!%p2109_p2)
}
  0x62   :  { %83 = dma.hbm_to_vmem [thread:$0]  %s3055_s10, 512, %s2436_s28, [#allocation9], %s2282_s27, %s2282_s27, %s2283_s8  }
  0x63   :  { %s2287_s30 = smov [#allocation13]   ;;  %s2288_s11 = smov [#allocation16]  }
  0x64   :  { %s99_s18 = sshll.u32 %s2287_s30, 4  ;;  %s124_s21 = sshll.u32 %s2288_s11, 4  ;;  %s100_s18 = int_to_ptr.vmem [resolvable:$true] %s99_s18  ;;  %s125_s21 = int_to_ptr.vmem [resolvable:$true] %s124_s21 }
  0x65   :  { %s2113_s1 = scalar_lea.hbm %s3057_s12, 512 }
  0x66   :  { %p2114_p3 = scmp.ne.s32.totalorder %s3057_s12, %s2113_s1  ;;  %p2117_p4 = scmp.lt.u32.totalorder %s2113_s1, %s3057_s12 }
  0x68   :  { %p2119_p5 = pnand %p2117_p4, %p2114_p3 }
  0x6a   :  { %2122 = shalt.err (!%p2119_p5)
}
  0x6b   :  { %s2123_s10 = scalar_lea.vmem %s100_s18, 512  ;;  %p2128_p7 = scmp.lt.s32.totalorder %s100_s18, %s100_s18 }
  0x6c   :  { %p2124_p6 = scmp.ne.s32.totalorder %s100_s18, %s2123_s10  ;;  %p2129_p8 = scmp.lt.s32.totalorder %s2123_s10, %s2123_s10 }
  0x6e   :  { %p2130_p9 = por %p2129_p8, %p2128_p7 }
  0x70   :  { %p2131_p10 = pnand %p2130_p9, %p2124_p6 }
  0x72   :  { %2134 = shalt.err (!%p2131_p10)
}
  0x73   :  { %105 = dma.hbm_to_vmem [thread:$0]  %s3057_s12, 512, %s100_s18, [#allocation12], %s2282_s27, %s2282_s27, %s2283_s8  }
  0x74   :  { %s2135_s5 = scalar_lea.hbm %s3059_s14, 128 }
  0x75   :  { %p2136_p11 = scmp.ne.s32.totalorder %s3059_s14, %s2135_s5  ;;  %p2139_p12 = scmp.lt.u32.totalorder %s2135_s5, %s3059_s14 }
  0x77   :  { %p2141_p13 = pnand %p2139_p12, %p2136_p11 }
  0x79   :  { %2144 = shalt.err (!%p2141_p13)
}
  0x7a   :  { %s2145_s19 = scalar_lea.vmem %s125_s21, 128  ;;  %p2150_p1 = scmp.lt.s32.totalorder %s125_s21, %s125_s21 }
  0x7b   :  { %p2146_p0 = scmp.ne.s32.totalorder %s125_s21, %s2145_s19  ;;  %p2151_p2 = scmp.lt.s32.totalorder %s2145_s19, %s2145_s19 }
  0x7d   :  { %p2152_p3 = por %p2151_p2, %p2150_p1 }
  0x7f   :  { %p2153_p4 = pnand %p2152_p3, %p2146_p0 }
  0x81   :  { %2156 = shalt.err (!%p2153_p4)
}
  0x82   :  { %127 = dma.hbm_to_vmem [thread:$0]  %s3059_s14, 128, %s125_s21, [#allocation15]  }
  0x83   :  { %s2289_s8 = smov [#allocation17]   ;;  %s2157_s22 = scalar_lea.hbm %s3061_s16, 128 }
  0x84   :  { %s136_s18 = sshll.u32 %s2289_s8, 4  ;;  %p2158_p5 = scmp.ne.s32.totalorder %s3061_s16, %s2157_s22  ;;  %s137_s18 = int_to_ptr.vmem [resolvable:$true] %s136_s18 }
  0x85   :  { %p2161_p6 = scmp.lt.u32.totalorder %s2157_s22, %s3061_s16 }
  0x87   :  { %p2163_p7 = pnand %p2161_p6, %p2158_p5 }
  0x89   :  { %2166 = shalt.err (!%p2163_p7)
}
  0x8a   :  { %s2167_s0 = scalar_lea.vmem %s137_s18, 128  ;;  %p2172_p9 = scmp.lt.s32.totalorder %s137_s18, %s137_s18 }
  0x8b   :  { %p2168_p8 = scmp.ne.s32.totalorder %s137_s18, %s2167_s0  ;;  %p2173_p10 = scmp.lt.s32.totalorder %s2167_s0, %s2167_s0 }
  0x8d   :  { %p2174_p11 = por %p2173_p10, %p2172_p9 }
  0x8f   :  { %p2175_p12 = pnand %p2174_p11, %p2168_p8 }
  0x91   :  { %2178 = shalt.err (!%p2175_p12)
}
  0x92   :  { %139 = dma.hbm_to_vmem [thread:$0]  %s3061_s16, 128, %s137_s18, [#allocation18]  }
  0x93   :  { %2223 = dma.done.wait [#allocation6], 16  }
  0x94   :  { %2224 = vsyncadd [#allocation6], 4294967280 }
  0x95   :  { %2225 = dma.done.wait [#allocation5], 128  }
  0x96   :  { %2226 = vsyncadd [#allocation5], 4294967168 }
  0x97   :  { %2227 = dma.done.wait [#allocation9], 640  }
  0x98   :  { %2228 = vsyncadd [#allocation9], 4294966656 }
  0x99   :  { %2229 = dma.done.wait [#allocation12], 640  }
  0x9a   :  { %2230 = vsyncadd [#allocation12], 4294966656 }
  0x9b   :  { %2231 = dma.done.wait [#allocation15], 640  }
  0x9c   :  { %2232 = vsyncadd [#allocation15], 4294966656 }
  0x9d   :  { %2233 = dma.done.wait [#allocation18], 128  }
  0x9e   :  { %2234 = vsyncadd [#allocation18], 4294967168 }
  0x9f   :  { %167 = sfence }
  0xa0   :  { %s3067_s5 = sld [smem:[#allocation26_spill]]  ;;  %v2290_v2 = vmov 0   ;;  %v424_v5 = vld [vmem:[%s3054_s9] sm:$0xff]  ;;  %v425_v6 = vld [vmem:[%s3054_s9 + $0x8] sm:$0xff]  ;;  %v426_v8 = vld [vmem:[%s3054_s9 + $0x10] sm:$0xff]  ;;  %v176_v47 = vlaneseq  ;;  %vm230_vm0 = vcmask 261120  }
  0xa1   :  { %1966 = vset.pattern.permute.xlu1 %v2290_v2  ;;  %1965 = vset.pattern.permute.xlu0 %v2290_v2  ;;  %v2527_v7 = vpack.c.bf16 %v425_v6, %v424_v5  ;;  %v427_v9 = vld [vmem:[%s3054_s9 + $0x18] sm:$0xff]  ;;  %v428_v13 = vld [vmem:[%s3054_s9 + $0x20] sm:$0xff]  ;;  %v429_v14 = vld [vmem:[%s3054_s9 + $0x28] sm:$0xff]  ;;  %v2291_v51 = vmov 0.0  }
  0xa2   :  { %v2541_v12 = vpack.c.bf16 %v427_v9, %v426_v8  ;;  %v226_v15 = vld [vmem:[%s3048_s3] sm:$0xff]  ;;  %v227_v16 = vld [vmem:[%s3048_s3 + $0x8] sm:$0xff]  ;;  %v228_v18 = vld [vmem:[%s3048_s3 + $0x10] sm:$0xff]  ;;  %v2570_v23 = vpack.c.bf16 %v429_v14, %v428_v13  ;;  %v2650_v48 = vand.u32 127, %v176_v47 }
  0xa3   :  { %1836 = vmatprep.subr.bf16.mxu1 %v2527_v7  ;;  %v1730_v17 = vpack.c.bf16 %v227_v16, %v226_v15  ;;  %v229_v19 = vld [vmem:[%s3048_s3 + $0x18] sm:$0xff]  ;;  %v370_v22 = vld [vmem:[%s3047_s2 + $0x10] sm:$0xff]  ;;  %v432_v29 = vld [vmem:[%s3054_s9 + $0x40] sm:$0xff] }
  0xa4   :  { %1844 = vmatpush3.bf16.msra.mxu1 %v2527_v7  ;;  %v1734_v20 = vpack.c.bf16 %v229_v19, %v228_v18  ;;  %v371_v21 = vld [vmem:[%s3047_s2 + $0x18] sm:$0xff]  ;;  %v430_v24 = vld [vmem:[%s3054_s9 + $0x30] sm:$0xff]  ;;  %v433_v30 = vld [vmem:[%s3054_s9 + $0x48] sm:$0xff] }
  0xa5   :  { %1837 = vmatprep.subr.bf16.mxu1 %v2541_v12  ;;  %1731 = vmatprep.subr.bf16.mxu0 %v1730_v17  ;;  %v431_v25 = vld [vmem:[%s3054_s9 + $0x38] sm:$0xff]  ;;  %v373_v31 = vld [vmem:[%s3047_s2 + $0x28] sm:$0xff]  ;;  %v372_v32 = vld [vmem:[%s3047_s2 + $0x20] sm:$0xff]  ;;  %v2603_v33 = vpack.c.bf16 %v433_v30, %v432_v29 }
  0xa6   :  { %v170_v0 = vld [vmem:[%s3067_s5 + $0x10] sm:$0xff]  ;;  %v168_v1 = vld [vmem:[%s3067_s5] sm:$0xff]  ;;  %v171_v3 = vld [vmem:[%s3067_s5 + $0x18] sm:$0xff]  ;;  %1733 = vmatpush3.bf16.msra.mxu0 %v1730_v17  ;;  %v2586_v28 = vpack.c.bf16 %v431_v25, %v430_v24 }
  0xa7   :  { %185 = vperm.xlu1 %1966, %v170_v0   ;;  %179 = vperm.xlu0 %1965, %v168_v1   ;;  %v169_v4 = vld [vmem:[%s3067_s5 + $0x8] sm:$0xff]  ;;  %v172_v11 = vld [vmem:[%s3067_s5 + $0x20] sm:$0xff]  ;;  %v175_v26 = vld [vmem:[%s3067_s5 + $0x38] sm:$0xff]  ;;  %v2292_v0 = vmov 1.0  }
  0xa8   :  { %v173_v10 = vld [vmem:[%s3067_s5 + $0x28] sm:$0xff]  ;;  %1845 = vmatpush3.bf16.msra.mxu1 %v2541_v12  ;;  %1735 = vmatprep.subr.bf16.mxu0 %v1734_v20  ;;  %v174_v27 = vld [vmem:[%s3067_s5 + $0x30] sm:$0xff]  ;;  %v435_v35 = vld [vmem:[%s3054_s9 + $0x58] sm:$0xff] }
  0xa9   :  { %1838 = vmatprep.subr.bf16.mxu1 %v2570_v23  ;;  %v434_v34 = vld [vmem:[%s3054_s9 + $0x50] sm:$0xff]  ;;  %v368_v37 = vld [vmem:[%s3047_s2] sm:$0xff]  ;;  %v437_v40 = vld [vmem:[%s3054_s9 + $0x68] sm:$0xff] }
  0xaa   :  { %1737 = vmatpush3.bf16.msra.mxu0 %v1734_v20  ;;  %v374_v36 = vld [vmem:[%s3047_s2 + $0x30] sm:$0xff]  ;;  %v2619_v38 = vpack.c.bf16 %v435_v35, %v434_v34  ;;  %v436_v39 = vld [vmem:[%s3054_s9 + $0x60] sm:$0xff]  ;;  %v375_v41 = vld [vmem:[%s3047_s2 + $0x38] sm:$0xff] }
  0xab   :  { %188 = vperm.xlu1 %1966, %v171_v3   ;;  %182 = vperm.xlu0 %1965, %v169_v4   ;;  %v369_v42 = vld [vmem:[%s3047_s2 + $0x8] sm:$0xff]  ;;  %v2635_v43 = vpack.c.bf16 %v437_v40, %v436_v39  ;;  %v438_v44 = vld [vmem:[%s3054_s9 + $0x70] sm:$0xff]  ;;  %v439_v45 = vld [vmem:[%s3054_s9 + $0x78] sm:$0xff] }
  0xac   :  { %1846 = vmatpush3.bf16.msra.mxu1 %v2570_v23  ;;  %1739 = vmatprep.subr.bf16.mxu0 %v2527_v7  ;;  %v2644_v46 = vpack.c.bf16 %v439_v45, %v438_v44  ;;  %v2712_v13 = vld [vmem:[%s3049_s4 + $0x10] sm:$0xff]  ;;  %v2717_v14 = vld [vmem:[%s3049_s4 + $0x18] sm:$0xff]  ;;  %v2719_v15 = vld [vmem:[#allocation7] sm:$0xff]  ;;  %v2769_v44 = vmov 0.0  }
  0xad   :  { %1839 = vmatprep.subr.bf16.mxu1 %v2586_v28  ;;  %v2724_v16 = vld [vmem:[%s3051_s6] sm:$0xff]  ;;  %v2729_v17 = vld [vmem:[%s3051_s6 + $0x8] sm:$0xff]  ;;  %v2734_v18 = vld [vmem:[%s3051_s6 + $0x10] sm:$0xff] }
  0xae   :  { %v2739_v19 = vld [vmem:[%s3051_s6 + $0x18] sm:$0xff]  ;;  %v2744_v20 = vld [vmem:[%s3052_s7] sm:$0xff]  ;;  %v2761_v24 = vld [vmem:[#allocation8] sm:$0xff]  ;;  %s2771_s6 = smov 0  }
  0xaf   :  { %194 = vperm.xlu1 %1966, %v173_v10   ;;  %191 = vperm.xlu0 %1965, %v172_v11   ;;  %v2702_v11 = vld [vmem:[%s3049_s4] sm:$0xff] }
  0xb0   :  { %1847 = vmatpush3.bf16.msra.mxu1 %v2586_v28 }
  0xb1   :  { %1840 = vmatprep.subr.bf16.mxu1 %v2603_v33 }
  0xb3   :  { %386 = vperm.xlu1 %1966, %v371_v21   ;;  %383 = vperm.xlu0 %1965, %v370_v22   ;;  %v2749_v21 = vld [vmem:[%s3052_s7 + $0x8] sm:$0xff]  ;;  %v2754_v22 = vld [vmem:[%s3052_s7 + $0x10] sm:$0xff] }
  0xb4   :  { %1848 = vmatpush3.bf16.msra.mxu1 %v2603_v33 }
  0xb5   :  { %1841 = vmatprep.subr.bf16.mxu1 %v2619_v38 }
  0xb7   :  { %200 = vperm.xlu1 %1966, %v175_v26   ;;  %197 = vperm.xlu0 %1965, %v174_v27  }
  0xb8   :  { %1849 = vmatpush3.bf16.msra.mxu1 %v2619_v38 }
  0xb9   :  { %1842 = vmatprep.subr.bf16.mxu1 %v2635_v43 }
  0xbb   :  { %392 = vperm.xlu1 %1966, %v373_v31   ;;  %389 = vperm.xlu0 %1965, %v372_v32  }
  0xbc   :  { %1850 = vmatpush3.bf16.msra.mxu1 %v2635_v43 }
  0xbd   :  { %1843 = vmatprep.subr.bf16.mxu1 %v2644_v46 }
  0xbf   :  { %395 = vperm.xlu1 %1966, %v374_v36   ;;  %377 = vperm.xlu0 %1965, %v368_v37  }
  0xc0   :  { %1851 = vmatpush3.bf16.msra.mxu1 %v2644_v46 }
  0xc3   :  { %398 = vperm.xlu1 %1966, %v375_v41   ;;  %380 = vperm.xlu0 %1965, %v369_v42   ;;  %v2763_v41 = vmov 0.0   ;;  %v2765_v42 = vmov 0.0  }
 0x126   :  { %v186_v49 = vpop.permute.xlu1 %185  ;;  %v180_v50 = vpop.permute.xlu0 %179 }
 0x127   :  { %vm202_vm1 = vcmp.eq.s32.totalorder %v180_v50, %v2650_v48  ;;  %vm204_vm2 = vcmp.eq.s32.totalorder %v186_v49, %v2650_v48 }
 0x128   :  { %v1415_v52 = vsel %vm202_vm1, 1.0, %v2291_v51  ;;  %v1417_v55 = vsel %vm204_vm2, 1.0, %v2291_v51 }
 0x129   :  { %1562 = vmatprep.mubr.msk.f32.mxu0 %vm230_vm0, %v1415_v52 }
 0x12a   :  { %v189_v53 = vpop.permute.xlu1 %188  ;;  %v183_v54 = vpop.permute.xlu0 %182 }
 0x12b   :  { %vm205_vm3 = vcmp.eq.s32.totalorder %v189_v53, %v2650_v48  ;;  %vm203_vm4 = vcmp.eq.s32.totalorder %v183_v54, %v2650_v48 }
 0x12c   :  { %v1416_v56 = vsel %vm203_vm4, 1.0, %v2291_v51  ;;  %v1418_v57 = vsel %vm205_vm3, 1.0, %v2291_v51 }
 0x12d   :  { %1563 = vmatmul.mubr.msk.f32.vlgmr.msra.gmra.mrb[0].mxu0 %vm230_vm0, %v1416_v56 }
 0x12e   :  { %1741 = vmatpush3.bf16.msra.mxu0 %v2527_v7  ;;  %v195_v58 = vpop.permute.xlu1 %194  ;;  %v192_v59 = vpop.permute.xlu0 %191  ;;  %1565 = vmatprep.mubr.msk.f32.mxu0 %vm230_vm0, %v1417_v55 }
 0x12f   :  { %vm206_vm5 = vcmp.eq.s32.totalorder %v192_v59, %v2650_v48  ;;  %1743 = vmatprep.subr.bf16.mxu0 %v2541_v12  ;;  %vm207_vm6 = vcmp.eq.s32.totalorder %v195_v58, %v2650_v48 }
 0x130   :  { %v1419_v60 = vsel %vm206_vm5, 1.0, %v2291_v51  ;;  %v1420_v63 = vsel %vm207_vm6, 1.0, %v2291_v51 }
 0x131   :  { %1566 = vmatmul.mubr.msk.f32.gmra.mrb[2].mxu0 %vm230_vm0, %v1418_v57 }
 0x132   :  { %1745 = vmatpush3.bf16.msra.mxu0 %v2541_v12  ;;  %v387_v61 = vpop.permute.xlu1 %386  ;;  %1568 = vmatprep.mubr.msk.f32.mxu0 %vm230_vm0, %v1419_v60  ;;  %v384_v62 = vpop.permute.xlu0 %383  ;;  %v2707_v12 = vld [vmem:[%s3049_s4 + $0x8] sm:$0xff] }
 0x133   :  { %vm403_vm7 = vcmp.eq.s32.totalorder %v387_v61, %v2650_v48  ;;  %1747 = vmatprep.subr.bf16.mxu0 %v2570_v23  ;;  %vm402_vm8 = vcmp.eq.s32.totalorder %v384_v62, %v2650_v48 }
 0x134   :  { %1609 = vmatprep.mubr.msk.f32.mxu1 %vm402_vm8, %v2292_v0 }
 0x135   :  { %1569 = vmatmul.mubr.msk.f32.gmra.mrb[4].mxu0 %vm230_vm0, %v1420_v63  ;;  %1610 = vmatmul.mubr.msk.f32.vlgmr.msra.gmra.mrb[0].mxu1 %vm403_vm7, %v2292_v0 }
 0x136   :  { %1749 = vmatpush3.bf16.msra.mxu0 %v2570_v23  ;;  %v201_v1 = vpop.permute.xlu1 %200  ;;  %v198_v2 = vpop.permute.xlu0 %197  ;;  %v2759_v23 = vld [vmem:[%s3052_s7 + $0x18] sm:$0xff] }
 0x137   :  { %vm209_vm9 = vcmp.eq.s32.totalorder %v201_v1, %v2650_v48  ;;  %vm208_vm10 = vcmp.eq.s32.totalorder %v198_v2, %v2650_v48  ;;  %1751 = vmatprep.subr.bf16.mxu0 %v2586_v28 }
 0x138   :  { %v1422_v3 = vsel %vm209_vm9, 1.0, %v2291_v51  ;;  %v1421_v4 = vsel %vm208_vm10, 1.0, %v2291_v51 }
 0x139   :  { %1571 = vmatprep.mubr.msk.f32.mxu0 %vm230_vm0, %v1421_v4 }
 0x13a   :  { %1753 = vmatpush3.bf16.msra.mxu0 %v2586_v28  ;;  %v393_v5 = vpop.permute.xlu1 %392  ;;  %v390_v6 = vpop.permute.xlu0 %389 }
 0x13b   :  { %vm405_vm11 = vcmp.eq.s32.totalorder %v393_v5, %v2650_v48  ;;  %1572 = vmatmul.mubr.msk.f32.gmra.mrb[6].mxu0 %vm230_vm0, %v1422_v3  ;;  %vm404_vm12 = vcmp.eq.s32.totalorder %v390_v6, %v2650_v48  ;;  %1755 = vmatprep.subr.bf16.mxu0 %v2603_v33 }
 0x13c   :  { %1612 = vmatprep.mubr.msk.f32.mxu1 %vm404_vm12, %v2292_v0 }
 0x13d   :  { %1613 = vmatmul.mubr.msk.f32.gmra.mrb[2].mxu1 %vm405_vm11, %v2292_v0 }
 0x13e   :  { %1757 = vmatpush3.bf16.msra.mxu0 %v2603_v33  ;;  %v396_v7 = vpop.permute.xlu1 %395  ;;  %v378_v8 = vpop.permute.xlu0 %377 }
 0x13f   :  { %vm406_vm13 = vcmp.eq.s32.totalorder %v396_v7, %v2650_v48  ;;  %vm400_vm14 = vcmp.eq.s32.totalorder %v378_v8, %v2650_v48  ;;  %1759 = vmatprep.subr.bf16.mxu0 %v2619_v38 }
 0x140   :  { %1606 = vmatprep.mubr.msk.f32.mxu0 %vm400_vm14, %v2292_v0  ;;  %1615 = vmatprep.mubr.msk.f32.mxu1 %vm406_vm13, %v2292_v0 }
 0x142   :  { %1761 = vmatpush3.bf16.msra.mxu0 %v2619_v38  ;;  %v399_v9 = vpop.permute.xlu1 %398  ;;  %v381_v10 = vpop.permute.xlu0 %380 }
 0x143   :  { %vm407_vm15 = vcmp.eq.s32.totalorder %v399_v9, %v2650_v48  ;;  %1763 = vmatprep.subr.bf16.mxu0 %v2635_v43  ;;  %vm401_vm1 = vcmp.eq.s32.totalorder %v381_v10, %v2650_v48 }
 0x144   :  { %1616 = vmatmul.mubr.msk.f32.gmra.mrb[4].mxu1 %vm407_vm15, %v2292_v0 }
 0x146   :  { %1765 = vmatpush3.bf16.msra.mxu0 %v2635_v43  ;;  %v2767_v43 = vmov 0.0  }
 0x147   :  { %1767 = vmatprep.subr.bf16.mxu0 %v2644_v46 }
 0x14a   :  { %1769 = vmatpush3.bf16.msra.mxu0 %v2644_v46 }
 0x14d   :  { %1607 = vmatmul.mubr.msk.f32.vlgmr.msra.gmra.mrb[8].mxu0 %vm401_vm1, %v2292_v0 }
 0x200   :  { %v1564_v25 = vpop.f32.mrb[0].mxu0 }
 0x201   :  { %361 = vst [vmem:[#allocation2 + $0x8] sm:$0xff] %v1564_v25  ;;  %v321_v26 = vpop.f32.mrb[1].mxu0 }
 0x202   :  { %360 = vst [vmem:[#allocation2] sm:$0xff] %v321_v26 }
 0x204   :  { %v1567_v27 = vpop.f32.mrb[2].mxu0 }
 0x205   :  { %363 = vst [vmem:[#allocation2 + $0x18] sm:$0xff] %v1567_v27  ;;  %v331_v28 = vpop.f32.mrb[3].mxu0 }
 0x206   :  { %362 = vst [vmem:[#allocation2 + $0x10] sm:$0xff] %v331_v28 }
 0x208   :  { %v1570_v29 = vpop.f32.mrb[4].mxu0  ;;  %v1611_v30 = vpop.f32.mrb[0].mxu1 }
 0x209   :  { %365 = vst [vmem:[#allocation2 + $0x28] sm:$0xff] %v1570_v29  ;;  %548 = vst [vmem:[#allocation3 + $0x18] sm:$0xff] %v1611_v30  ;;  %v341_v31 = vpop.f32.mrb[5].mxu0  ;;  %v516_v32 = vpop.f32.mrb[1].mxu1 }
 0x20a   :  { %364 = vst [vmem:[#allocation2 + $0x20] sm:$0xff] %v341_v31  ;;  %547 = vst [vmem:[#allocation3 + $0x10] sm:$0xff] %v516_v32 }
 0x20e   :  { %v1573_v33 = vpop.f32.mrb[6].mxu0 }
 0x20f   :  { %367 = vst [vmem:[#allocation2 + $0x38] sm:$0xff] %v1573_v33  ;;  %v351_v34 = vpop.f32.mrb[7].mxu0 }
 0x210   :  { %366 = vst [vmem:[#allocation2 + $0x30] sm:$0xff] %v351_v34  ;;  %v1614_v35 = vpop.f32.mrb[2].mxu1 }
 0x211   :  { %550 = vst [vmem:[#allocation3 + $0x28] sm:$0xff] %v1614_v35  ;;  %v526_v36 = vpop.f32.mrb[3].mxu1 }
 0x212   :  { %549 = vst [vmem:[#allocation3 + $0x20] sm:$0xff] %v526_v36 }
 0x217   :  { %v1617_v37 = vpop.f32.mrb[4].mxu1 }
 0x218   :  { %552 = vst [vmem:[#allocation3 + $0x38] sm:$0xff] %v1617_v37  ;;  %v536_v38 = vpop.f32.mrb[5].mxu1 }
 0x219   :  { %551 = vst [vmem:[#allocation3 + $0x30] sm:$0xff] %v536_v38 }
 0x220   :  { %v1608_v39 = vpop.f32.mrb[8].mxu0 }
 0x221   :  { %546 = vst [vmem:[#allocation3 + $0x8] sm:$0xff] %v1608_v39  ;;  %v506_v40 = vpop.f32.mrb[9].mxu0 }
 0x222   :  { %545 = vst [vmem:[#allocation3] sm:$0xff] %v506_v40 }
 0x223 LB: > { %v1771_v45 = vpack.c.bf16 %v2707_v12, %v2702_v11  ;;  %v2293_v46 = vmov 0.0|0.0   ;;  %s2294_s7 = smov 32   ;;  %v1774_v47 = vpack.c.bf16 %v2717_v14, %v2712_v13  ;;  %vm2295_vm2 = vmmov 0   ;;  %s1447_s23 = sshll.u32 %s2253_s6, 3  ;;  %s2253_s6 = sphi %s2771_s6, %s572_s6   ;;  %v2249_v44 = vphi %v2769_v44, %v3072_v44   ;;  %v2245_v43 = vphi %v2767_v43, %v3071_v43   ;;  %v2241_v42 = vphi %v2765_v42, %v3070_v42   ;;  %v2237_v41 = vphi %v2763_v41, %v3069_v41  }
 0x224   : > { %1770 = vmatprep.subr.bf16.mxu0 %v2293_v46  ;;  %1776 = vmatprep.subr.bf16.mxu1 %v2293_v46  ;;  %v2296_v49 = vmov 0.0   ;;  %s578_s24 = scalar_lea.vmem [#allocation2], %s1447_s23  ;;  %s2297_s2 = smov 64   ;;  %v1777_v4 = vpack.c.bf16 %v2749_v21, %v2744_v20  ;;  %v1783_v5 = vpack.c.bf16 %v2729_v17, %v2724_v16  ;;  %v1780_v6 = vpack.c.bf16 %v2759_v23, %v2754_v22 }
 0x225   : > { %581 = vrot.lane.b32.xlu0 %v2249_v44, %s2294_s7  ;;  %1772 = vmatpush3.bf16.msra.mxu0 %v1771_v45  ;;  %v579_v51 = vld [vmem:[%s578_s24] sm:$0xff]  ;;  %v1786_v7 = vpack.c.bf16 %v2739_v19, %v2734_v18  ;;  %s572_s6 = sadd.s32 1, %s2253_s6  }
 0x226   : > { %1773 = vmatprep.subr.bf16.mxu0 %v2293_v46  ;;  %1626 = vmatprep.mubr.msk.f32.mxu0 %vm2295_vm2, %v2296_v49  ;;  %p569_p13 = scmp.ge.s32.totalorder %s572_s6, 8  }
 0x227   : > { %1637 = vmatprep.mubr.msk.f32.mxu1 %vm2295_vm2, %v2296_v49  ;;  %1778 = vmatpush3.bf16.msra.mxu1 %v1777_v4  ;;  %877 = vst [vmem:[%s3062_s17] sm:$0xff] (%p569_p13), %v2292_v0  ;;  %v2845_v11 = vld [vmem:[#allocation13 + $0x18] sm:$0xff] (%p569_p13)  ;;  %v2847_v12 = vld [vmem:[#allocation14] sm:$0xff] (%p569_p13)  ;;  %v2849_v13 = vld [vmem:[#allocation14 + $0x8] sm:$0xff] (%p569_p13)  ;;  %s2890_s1 = smov (%p569_p13), 1  }
 0x228   : > { %1779 = vmatprep.subr.bf16.mxu1 %v2293_v46  ;;  %v2851_v14 = vld [vmem:[#allocation14 + $0x10] sm:$0xff] (%p569_p13)  ;;  %v2855_v0 = vld [vmem:[#allocation16] sm:$0xff] (%p569_p13)  ;;  %v2860_v16 = vld [vmem:[%s3060_s15] sm:$0xff] (%p569_p13) }
 0x229   : > { %1775 = vmatpush3.bf16.msra.mxu0 %v1774_v47  ;;  %v2865_v17 = vld [vmem:[%s3060_s15 + $0x8] sm:$0xff] (%p569_p13)  ;;  %v2870_v18 = vld [vmem:[%s3060_s15 + $0x10] sm:$0xff] (%p569_p13)  ;;  %v2875_v19 = vld [vmem:[%s3060_s15 + $0x18] sm:$0xff] (%p569_p13) }
 0x22a   : > { %1782 = vmatprep.subr.bf16.mxu0 %v2293_v46  ;;  %v2877_v20 = vld [vmem:[#allocation17] sm:$0xff] (%p569_p13) }
 0x22b   : > { %1781 = vmatpush3.bf16.msra.mxu1 %v1780_v6  ;;  %v878_v21 = vld [vmem:[#allocation3] sm:$0xff] (%p569_p13)  }
 0x297   : > { %v582_v50 = vpop.permute.xlu0 %581 }
 0x298   : > { %1627 = vmatmul.mubr.msk.f32.vlgmr.msra.gmra.mrb[0].mxu0 %vm230_vm0, %v582_v50  ;;  %v2827_v50 = vld [vmem:[#allocation10 + $0x8] sm:$0xff] (%p569_p13) }
 0x299   : > { %1648 = vmatprep.mubr.msk.f32.mxu0 %vm2295_vm2, %v2296_v49  ;;  %1784 = vmatpush3.bf16.msra.mxu0 %v1783_v5  ;;  %v2825_v49 = vld [vmem:[#allocation10] sm:$0xff] (%p569_p13) }
 0x29a   : > { %1785 = vmatprep.subr.bf16.mxu0 %v2293_v46 }
 0x29d   : > { %1787 = vmatpush3.bf16.msra.mxu0 %v1786_v7 }
 0x36b   : > { %v651_v52 = vpop.f32.mrb[0].mxu0 }
 0x36c   : > { %v655_v53 = vadd.f32 %v651_v52, %v579_v51  ;;  %v1628_v54 = vpop.f32.mrb[1].mxu0  ;;  %v2829_v51 = vld [vmem:[#allocation10 + $0x10] sm:$0xff] (%p569_p13)  ;;  %v2835_v52 = vld [vmem:[#allocation10 + $0x18] sm:$0xff] (%p569_p13) }
 0x36d   :  { %v2839_v54 = vld [vmem:[#allocation13] sm:$0xff] (%p569_p13) }
 0x36e   : > { %v656_v55 = vadd.f32 %v655_v53, %v2719_v15  ;;  %v2837_v53 = vld [vmem:[#allocation11] sm:$0xff] (%p569_p13) }
 0x36f   :  { %v2853_v15 = vld [vmem:[#allocation14 + $0x18] sm:$0xff] (%p569_p13) }
 0x370   : > { %v1449_v56 = vmul.f32 -1.442695, %v656_v55  ;;  %v2841_v55 = vld [vmem:[#allocation13 + $0x8] sm:$0xff] (%p569_p13) }
 0x372   : > { %1967 = vpow2.f32 %v1449_v56  ;;  %v2843_v56 = vld [vmem:[#allocation13 + $0x10] sm:$0xff] (%p569_p13) }
 0x37c   : > { %v1968_v57 = vpop.eup %1967 }
 0x37d   : > { %v660_v58 = vadd.f32 1.0, %v1968_v57 }
 0x37f   : > { %1969 = vrcp.f32 %v660_v58 }
 0x389   : > { %v1970_v59 = vpop.eup %1969 }
 0x38a   : > { %v663_v60 = vmul.f32 2.0, %v1970_v59  ;;  %v665_v1 = vmul.f32 %v2245_v43, %v1970_v59 }
 0x38c   : > { %v1450_v61 = vadd.f32 -1.0, %v663_v60 }
 0x38e   : > { %667 = vrot.lane.b32.xlu0 %v1450_v61, %s2297_s2 }
 0x392   : > { %683 = vrot.lane.b32.xlu0 %v2241_v42, %s2294_s7 }
 0x400   : > { %v668_v62 = vpop.permute.xlu0 %667 }
 0x401   : > { %v670_v63 = vmul.f32 %v1970_v59, %v668_v62 }
 0x403   : > { %672 = vrot.lane.b32.xlu1 %v670_v63, %s2294_s7 }
 0x404   : > { %v684_v9 = vpop.permute.xlu0 %683 }
 0x405   : > { %1638 = vmatmul.mubr.msk.f32.vlgmr.msra.gmra.mrb[0].mxu1 %vm230_vm0, %v684_v9 }
 0x475   : > { %v673_v2 = vpop.permute.xlu1 %672 }
 0x476   : > { %v2792_v43 = vadd.f32 %v673_v2, %v665_v1  }
 0x478   : > { %v3068_v3 = vmov %v2792_v43 }
 0x479   : > { %1971 = vtanh.f32 %v3068_v3 }
 0x483   : > { %v1972_v8 = vpop.eup %1971 }
 0x484   : > { %678 = vrot.lane.b32.xlu1 %v1972_v8, %s2297_s2 }
 0x4d8   : > { %v753_v27 = vpop.f32.mrb[0].mxu1 }
 0x4d9   : > { %v1639_v28 = vpop.f32.mrb[1].mxu1 }
 0x4f6   : > { %v679_v10 = vpop.permute.xlu1 %678 }
 0x4f7   : > { %v681_v25 = vmul.f32 %v1970_v59, %v679_v10  }
 0x4f9   : > { %758 = vrot.lane.b32.xlu1 %v681_v25, %s2294_s7 }
 0x56b   : > { %v759_v26 = vpop.permute.xlu1 %758 }
 0x56c   : > { %1649 = vmatmul.mubr.msk.f32.vlgmr.msra.gmra.mrb[2].mxu0 %vm230_vm0, %v759_v26 }
 0x63f   : > { %v828_v29 = vpop.f32.mrb[2].mxu0 }
 0x640   : > { %v829_v30 = vadd.f32 %v828_v29, %v753_v27  ;;  %v1650_v31 = vpop.f32.mrb[3].mxu0 }
 0x642   : > { %v832_v32 = vadd.f32 %v829_v30, %v2761_v24 }
 0x644   : > { %v1453_v33 = vmul.f32 -1.442695, %v832_v32 }
 0x646   : > { %1973 = vpow2.f32 %v1453_v33 }
 0x650   : > { %v1974_v34 = vpop.eup %1973 }
 0x651   : > { %v836_v35 = vadd.f32 1.0, %v1974_v34 }
 0x653   : > { %1975 = vrcp.f32 %v836_v35 }
 0x65d   : > { %v1976_v36 = vpop.eup %1975 }
 0x65e   : > { %v839_v37 = vmul.f32 2.0, %v1976_v36  ;;  %v841_v42 = vmul.f32 %v2237_v41, %v1976_v36 }
 0x660   : > { %v1454_v38 = vadd.f32 -1.0, %v839_v37 }
 0x662   : > { %843 = vrot.lane.b32.xlu0 %v1454_v38, %s2297_s2 }
 0x6d4   : > { %v844_v39 = vpop.permute.xlu0 %843 }
 0x6d5   : > { %v846_v40 = vmul.f32 %v1976_v36, %v844_v39 }
 0x6d7   : > { %848 = vrot.lane.b32.xlu1 %v846_v40, %s2294_s7 }
 0x749   : > { %v849_v43 = vpop.permute.xlu1 %848 }
 0x74a   : > { %v851_v45 = vadd.f32 %v849_v43, %v841_v42   ;;  %v3071_v43 = vmov %v3068_v3 }
 0x74c   : > { %1977 = vtanh.f32 %v851_v45  ;;  %v3069_v41 = vmov %v851_v45 }
 0x756   : > { %v1978_v44 = vpop.eup %1977 }
 0x757   : > { %854 = vrot.lane.b32.xlu0 %v1978_v44, %s2297_s2  ;;  %v3072_v44 = vmov %v681_v25 }
 0x7c6   :  { %571 = sbr.rel (!%p569_p13) target bundleno = 547 (0x223), region = 141 }
 0x7c9   : > { %v855_v46 = vpop.permute.xlu0 %854 }
 0x7ca   : > { %v857_v47 = vmul.f32 %v1976_v36, %v855_v46  }
 0x7cc   : > { %v3070_v42 = vmov %v857_v47 }
 0x7cd LB: > { %v1789_v22 = vpack.c.bf16 %v2827_v50, %v2825_v49  ;;  %v2298_v23 = vmov 0.0|0.0   ;;  %s2299_s15 = smov 32   ;;  %v1792_v24 = vpack.c.bf16 %v2835_v52, %v2829_v51  ;;  %vm2300_vm3 = vmmov 0   ;;  %s2302_s20 = smov 64   ;;  %s2277_s1 = sphi %s2890_s1, %s884_s1   ;;  %v2273_v21 = vphi %v878_v21, %v1361_v21   ;;  %v2269_v25 = vphi %v681_v25, %v2937_v25   ;;  %v2265_v3 = vphi %v3068_v3, %v2919_v3   ;;  %v2261_v47 = vphi %v857_v47, %v2956_v47   ;;  %v2257_v45 = vphi %v851_v45, %v2947_v45  }
 0x7ce   : > { %1788 = vmatprep.subr.bf16.mxu1 %v2298_v23  ;;  %1812 = vmatprep.subr.bf16.mxu0 %v2298_v23  ;;  %v2301_v41 = vmov 0.0   ;;  %v1795_v10 = vpack.c.bf16 %v2849_v13, %v2847_v12  ;;  %v1801_v27 = vpack.c.bf16 %v2841_v55, %v2839_v54  ;;  %v1804_v29 = vpack.c.bf16 %v2845_v11, %v2843_v56  ;;  %s1463_s22 = sshll.u32 %s2277_s1, 3  ;;  %s1353_s21 = sld [smem:[#allocation4 + %s2277_s1]] }
 0x7cf   : > { %891 = vrot.lane.b32.xlu0 %v2269_v25, %s2299_s15  ;;  %1790 = vmatpush3.bf16.msra.mxu1 %v1789_v22  ;;  %v1798_v25 = vpack.c.bf16 %v2853_v15, %v2851_v14  ;;  %s1244_s3 = scalar_lea.vmem %s3062_s17, %s1463_s22  ;;  %s1354_s6 = scalar_lea.vmem [#allocation3], %s1463_s22 }
 0x7d0   : > { %1791 = vmatprep.subr.bf16.mxu1 %v2298_v23  ;;  %1659 = vmatprep.mubr.msk.f32.mxu1 %vm2300_vm3, %v2301_v41  ;;  %s884_s1 = sadd.s32 1, %s2277_s1  }
 0x7d1   : > { %1727 = vmatprep.mubr.msk.f32.mxu0 %vm2300_vm3, %v2301_v41  ;;  %p881_p0 = scmp.ge.s32.totalorder %s884_s1, 8  }
 0x7d3   : > { %1793 = vmatpush3.bf16.msra.mxu1 %v1792_v24  ;;  %v1807_v24 = vpack.c.bf16 %v2865_v17, %v2860_v16 }
 0x7d4   : > { %1794 = vmatprep.subr.bf16.mxu1 %v2298_v23  ;;  %s1358_s13 = ssub.f32 1.0, %s1353_s21 }
 0x841   : > { %v892_v57 = vpop.permute.xlu0 %891 }
 0x842   : > { %1660 = vmatmul.mubr.msk.f32.vlgmr.msra.gmra.mrb[0].mxu1 %vm230_vm0, %v892_v57 }
 0x843   : > { %1670 = vmatprep.mubr.msk.f32.mxu1 %vm2300_vm3, %v2301_v41  ;;  %1796 = vmatpush3.bf16.msra.mxu1 %v1795_v10 }
 0x844   : > { %1797 = vmatprep.subr.bf16.mxu1 %v2298_v23 }
 0x847   : > { %1799 = vmatpush3.bf16.msra.mxu1 %v1798_v25 }
 0x848   : > { %1800 = vmatprep.subr.bf16.mxu1 %v2298_v23 }
 0x915   : > { %v961_v58 = vpop.f32.mrb[0].mxu1 }
 0x916   : > { %v965_v59 = vadd.f32 %v2273_v21, %v961_v58  ;;  %v1661_v60 = vpop.f32.mrb[1].mxu1 }
 0x918   : > { %v966_v61 = vadd.f32 %v965_v59, %v2837_v53 }
 0x91a   : > { %v1456_v62 = vmul.f32 -1.442695, %v966_v61 }
 0x91c   : > { %1979 = vpow2.f32 %v1456_v62 }
 0x926   : > { %v1980_v63 = vpop.eup %1979 }
 0x927   : > { %v970_v1 = vadd.f32 1.0, %v1980_v63 }
 0x929   : > { %1981 = vrcp.f32 %v970_v1 }
 0x933   : > { %v1982_v2 = vpop.eup %1981 }
 0x934   : > { %v973_v4 = vmul.f32 2.0, %v1982_v2  ;;  %v975_v8 = vmul.f32 %v2265_v3, %v1982_v2 }
 0x936   : > { %v1457_v5 = vadd.f32 -1.0, %v973_v4 }
 0x938   : > { %977 = vrot.lane.b32.xlu0 %v1457_v5, %s2302_s20  ;;  %v1267_v5 = vld [vmem:[%s3054_s9] sm:$0xff] }
 0x93c   : > { %993 = vrot.lane.b32.xlu0 %v2261_v47, %s2299_s15 }
 0x9aa   : > { %v978_v6 = vpop.permute.xlu0 %977 }
 0x9ab   : > { %v980_v7 = vmul.f32 %v1982_v2, %v978_v6  ;;  %v1268_v6 = vld [vmem:[%s3054_s9 + $0x8] sm:$0xff] }
 0x9ad   : > { %982 = vrot.lane.b32.xlu1 %v980_v7, %s2299_s15  ;;  %v1269_v7 = vld [vmem:[%s3054_s9 + $0x10] sm:$0xff] }
 0x9ae   : > { %v994_v26 = vpop.permute.xlu0 %993 }
 0x9af   : > { %1671 = vmatmul.mubr.msk.f32.vlgmr.msra.gmra.mrb[2].mxu1 %vm230_vm0, %v994_v26  ;;  %v1271_v26 = vld [vmem:[%s3054_s9 + $0x20] sm:$0xff] }
 0x9b0   : > { %1802 = vmatpush3.bf16.msra.mxu1 %v1801_v27  ;;  %1681 = vmatprep.mubr.msk.f32.mxu1 %vm2300_vm3, %v2301_v41  ;;  %v1272_v27 = vld [vmem:[%s3054_s9 + $0x28] sm:$0xff] }
 0x9b1   : > { %1803 = vmatprep.subr.bf16.mxu1 %v2298_v23 }
 0x9b4   : > { %1805 = vmatpush3.bf16.msra.mxu1 %v1804_v29  ;;  %v1273_v29 = vld [vmem:[%s3054_s9 + $0x30] sm:$0xff] }
 0x9b5   : > { %1806 = vmatprep.subr.bf16.mxu1 %v2298_v23 }
 0xa1f   : > { %v983_v9 = vpop.permute.xlu1 %982 }
 0xa20   : > { %v2919_v3 = vadd.f32 %v983_v9, %v975_v8   ;;  %v1813_v8 = vpack.c.bf16 %v1268_v6, %v1267_v5  ;;  %v1270_v9 = vld [vmem:[%s3054_s9 + $0x18] sm:$0xff] }
 0xa21   : > { %v1816_v10 = vpack.c.bf16 %v1270_v9, %v1269_v7 }
 0xa22   : > { %1983 = vtanh.f32 %v2919_v3  ;;  %1814 = vmatpush3.bf16.msra.mxu0 %v1813_v8 }
 0xa23   : > { %1815 = vmatprep.subr.bf16.mxu0 %v2298_v23 }
 0xa26   : > { %1817 = vmatpush3.bf16.msra.mxu0 %v1816_v10 }
 0xa27   : > { %1818 = vmatprep.subr.bf16.mxu0 %v2298_v23 }
 0xa2c   : > { %v1984_v28 = vpop.eup %1983 }
 0xa2d   : > { %988 = vrot.lane.b32.xlu1 %v1984_v28, %s2302_s20  ;;  %v1819_v28 = vpack.c.bf16 %v1272_v27, %v1271_v26 }
 0xa2f   : > { %1820 = vmatpush3.bf16.msra.mxu0 %v1819_v28 }
 0xa30   : > { %1821 = vmatprep.subr.bf16.mxu0 %v2298_v23 }
 0xa82   : > { %v1063_v31 = vpop.f32.mrb[2].mxu1 }
 0xa83   : > { %v1672_v32 = vpop.f32.mrb[3].mxu1 }
 0xa84   : > { %v1275_v32 = vld [vmem:[%s3054_s9 + $0x40] sm:$0xff] }
 0xa9f   : > { %v989_v30 = vpop.permute.xlu1 %988 }
 0xaa0   : > { %v2937_v25 = vmul.f32 %v1982_v2, %v989_v30   ;;  %v1274_v30 = vld [vmem:[%s3054_s9 + $0x38] sm:$0xff] }
 0xaa2   : > { %1068 = vrot.lane.b32.xlu1 %v2937_v25, %s2299_s15 }
 0xb14   : > { %v1069_v33 = vpop.permute.xlu1 %1068 }
 0xb15   : > { %1682 = vmatmul.mubr.msk.f32.vlgmr.msra.gmra.mrb[4].mxu1 %vm230_vm0, %v1069_v33  ;;  %v1276_v33 = vld [vmem:[%s3054_s9 + $0x48] sm:$0xff] }
 0xb16   : > { %1692 = vmatprep.mubr.msk.f32.mxu1 %vm2300_vm3, %v2301_v41  ;;  %1808 = vmatpush3.bf16.msra.mxu1 %v1807_v24  ;;  %v1810_v41 = vpack.c.bf16 %v2875_v19, %v2870_v18 }
 0xb17   : > { %1809 = vmatprep.subr.bf16.mxu1 %v2298_v23 }
 0xb1a   : > { %1811 = vmatpush3.bf16.msra.mxu1 %v1810_v41 }
 0xbe8   : > { %v1138_v34 = vpop.f32.mrb[4].mxu1 }
 0xbe9   : > { %v1139_v35 = vadd.f32 %v1138_v34, %v1063_v31  ;;  %v1683_v36 = vpop.f32.mrb[5].mxu1  ;;  %v1822_v31 = vpack.c.bf16 %v1274_v30, %v1273_v29  ;;  %v1825_v34 = vpack.c.bf16 %v1276_v33, %v1275_v32 }
 0xbea   : > { %v1278_v36 = vld [vmem:[%s3054_s9 + $0x58] sm:$0xff] }
 0xbeb   : > { %v1142_v37 = vadd.f32 %v1139_v35, %v2855_v0  ;;  %1823 = vmatpush3.bf16.msra.mxu0 %v1822_v31  ;;  %v1277_v35 = vld [vmem:[%s3054_s9 + $0x50] sm:$0xff] }
 0xbec   : > { %1824 = vmatprep.subr.bf16.mxu0 %v2298_v23 }
 0xbed   : > { %v1460_v38 = vmul.f32 -1.442695, %v1142_v37  ;;  %v1828_v37 = vpack.c.bf16 %v1278_v36, %v1277_v35 }
 0xbef   : > { %1985 = vpow2.f32 %v1460_v38  ;;  %1826 = vmatpush3.bf16.msra.mxu0 %v1825_v34  ;;  %v1279_v38 = vld [vmem:[%s3054_s9 + $0x60] sm:$0xff] }
 0xbf0   : > { %1827 = vmatprep.subr.bf16.mxu0 %v2298_v23 }
 0xbf3   : > { %1829 = vmatpush3.bf16.msra.mxu0 %v1828_v37 }
 0xbf4   : > { %1830 = vmatprep.subr.bf16.mxu0 %v2298_v23 }
 0xbf9   : > { %v1986_v39 = vpop.eup %1985 }
 0xbfa   : > { %v1146_v40 = vadd.f32 1.0, %v1986_v39  ;;  %v1280_v39 = vld [vmem:[%s3054_s9 + $0x68] sm:$0xff] }
 0xbfc   : > { %1987 = vrcp.f32 %v1146_v40  ;;  %v1831_v40 = vpack.c.bf16 %v1280_v39, %v1279_v38 }
 0xbfe   : > { %1832 = vmatpush3.bf16.msra.mxu0 %v1831_v40 }
 0xbff   : > { %1833 = vmatprep.subr.bf16.mxu0 %v2298_v23 }
 0xc06   : > { %v1988_v42 = vpop.eup %1987 }
 0xc07   : > { %v1149_v43 = vmul.f32 2.0, %v1988_v42  ;;  %v1151_v21 = vmul.f32 %v2257_v45, %v1988_v42 }
 0xc09   : > { %v1461_v44 = vadd.f32 -1.0, %v1149_v43 }
 0xc0b   : > { %1153 = vrot.lane.b32.xlu0 %v1461_v44, %s2302_s20 }
 0xc7d   : > { %v1154_v46 = vpop.permute.xlu0 %1153 }
 0xc7e   : > { %v1156_v47 = vmul.f32 %v1988_v42, %v1154_v46 }
 0xc80   : > { %1158 = vrot.lane.b32.xlu1 %v1156_v47, %s2299_s15 }
 0xcf2   : > { %v1159_v22 = vpop.permute.xlu1 %1158 }
 0xcf3   : > { %v2947_v45 = vadd.f32 %v1159_v22, %v1151_v21   ;;  %v1281_v21 = vld [vmem:[%s3054_s9 + $0x70] sm:$0xff]  ;;  %v1282_v22 = vld [vmem:[%s3054_s9 + $0x78] sm:$0xff] }
 0xcf4   : > { %v1834_v24 = vpack.c.bf16 %v1282_v22, %v1281_v21 }
 0xcf5   : > { %1989 = vtanh.f32 %v2947_v45 }
 0xcf6   : > { %1835 = vmatpush3.bf16.msra.mxu0 %v1834_v24 }
 0xcff   : > { %v1990_v57 = vpop.eup %1989 }
 0xd00   : > { %1164 = vrot.lane.b32.xlu0 %v1990_v57, %s2302_s20 }
 0xd72   : > { %v1165_v58 = vpop.permute.xlu0 %1164 }
 0xd73   : > { %v2956_v47 = vmul.f32 %v1988_v42, %v1165_v58  }
 0xd75   : > { %1169 = vrot.lane.b32.xlu1 %v2956_v47, %s2299_s15 }
 0xde7   : > { %v1170_v59 = vpop.permute.xlu1 %1169 }
 0xde8   : > { %1693 = vmatmul.mubr.msk.f32.vlgmr.msra.gmra.mrb[6].mxu1 %vm230_vm0, %v1170_v59 }
 0xebb   : > { %v1239_v60 = vpop.f32.mrb[6].mxu1 }
 0xebc   : > { %v1240_v61 = vadd.f32 %v1239_v60, %v2877_v20  ;;  %v1694_v62 = vpop.f32.mrb[7].mxu1  ;;  %v2303_v60 = vmov 1.0  }
 0xebd   : > { %v1356_v62 = vstv %s1353_s21 }
 0xebe   : > { %1245 = vst [vmem:[%s1244_s3] sm:$0xff] %v1240_v61  ;;  %1246 = vmax.xlane.f32.xlu0 %v1240_v61 }
 0xf4b   : > { %v1247_v63 = vpop.xlane.xlu0 %1246 }
 0xf4c   : > { %vm1248_vm4 = vcmp.eq.f32.partialorder %v1240_v61, %v1247_v63  ;;  %v1355_v61 = vld [vmem:[%s1354_s6] sm:$0xff]  ;;  %v1359_v63 = vstv %s1358_s13 }
 0xf4d   : > { %v1249_v1 = vsel %vm1248_vm4, %v2650_v48, 128 }
 0xf4e   : > { %v1251_v2 = vshra.s32 %v1249_v1, 16  ;;  %v1250_v42 = vand.u32 65535, %v1249_v1  ;;  %v1357_v1 = vmul.f32 %v1356_v62, %v1355_v61 }
 0xf50   : > { %v1253_v4 = vcvt.s32.f32 %v1251_v2  ;;  %v1252_v43 = vcvt.s32.f32 %v1250_v42 }
 0xf52   : > { %1254 = vmin.xlane.f32.xlu1 %v1253_v4 }
 0xfdf   : > { %v1255_v44 = vpop.xlane.xlu1 %1254 }
 0xfe0   : > { %vm1256_vm5 = vcmp.eq.f32.partialorder %v1253_v4, %v1255_v44  ;;  %v1261_v41 = vcvt.f32.s32 %v1255_v44 }
 0xfe1   : > { %v1257_v46 = vsel %vm1256_vm5, %v1252_v43, inf }
 0xfe2   : > { %1258 = vmin.xlane.f32.xlu0 %v1257_v46  ;;  %v1262_v57 = vshll.u32 %v1261_v41, 16 }
0x106f   : > { %v1259_v23 = vpop.xlane.xlu0 %1258 }
0x1070   : > { %v1260_v58 = vcvt.f32.s32 %v1259_v23 }
0x1072   : > { %v1263_v59 = vadd.s32 %v1262_v57, %v1260_v58 }
0x1074   : > { %vm1264_vm6 = vcmp.eq.s32.totalorder %v2650_v48, %v1263_v59 }
0x1075   : > { %1728 = vmatmul.mubr.msk.f32.vlgmr.msra.gmra.mrb[0].mxu0 %vm1264_vm6, %v2303_v60 }
0x1145   :  { %883 = sbr.rel (!%p881_p0) target bundleno = 1997 (0x7cd), region = 152 }
0x1148   : > { %v1349_v2 = vpop.f32.mrb[0].mxu0 }
0x1149   : > { %v1360_v4 = vmul.f32 %v1359_v63, %v1349_v2  ;;  %v1729_v5 = vpop.f32.mrb[1].mxu0 }
0x114b   : > { %v1361_v21 = vadd.f32 %v1360_v4, %v1357_v1  }
0x114c   :  { %1366 = vsyncpa [#allocation5], 1 }
0x114d   :  { %1367 = vsyncpa [#allocation9], 1 }
0x114e   :  { %1368 = vsyncpa [#allocation12], 1 }
0x114f   :  { %1369 = vsyncpa [#allocation15], 1 }
0x1150   :  { %1370 = vsyncpa [#allocation18], 1 }
0x1151   :  { %1371 = vsyncpa [#allocation6], 1 }

</bundles_post_ra>
